<compile_context>
chip_gen: v6e
topology: v6e:2x2x1
jax: 0.10.0
libtpu: 0.0.40
codegen_flags: <defaults>
</compile_context>

<pallas_src>
import functools

import jax
import jax.numpy as jnp
from jax.experimental import pallas as pl
from jax.experimental.pallas import tpu as pltpu

SIZES = [3, 16, 32, 64, 128, 256, 512, 5]  # input_dim=3, output_dim=5
N_LAYERS = len(SIZES) - 1

PAD_IN = 8     # pad 3-wide input features up to a full sublane
PAD_OUT = 128  # pad 5-wide output up to a full lane width (unmasked stores)


def _round_up(n, m):
    return ((n + m - 1) // m) * m


def mlp_kernel(x_ref, *refs):
    """refs = (w0, b0, w1, b1, ..., w6, b6, out_ref). Whole MLP in one kernel."""
    out_ref = refs[-1]
    params = refs[:-1]
    h = x_ref[...]  # compute dtype (bf16 fast path, f32 exact path)
    for i in range(N_LAYERS):
        w = params[2 * i][...]
        b = params[2 * i + 1][...].astype(jnp.float32)
        acc = jnp.dot(h, w, preferred_element_type=jnp.float32) + b  # f32 accumulate
        if i < N_LAYERS - 1:
            acc = jnp.maximum(acc, 0.0)          # ReLU in f32 (v5e-safe)
            h = acc.astype(w.dtype)              # back to compute dtype for next MXU pass
        else:
            h = acc
    out_ref[...] = h.astype(out_ref.dtype)


def init_params(key):
    """Deterministic init mimicking torch.nn.Linear default (U[-1/sqrt(fan_in), +])."""
    params = []
    for i in range(N_LAYERS):
        fan_in, fan_out = SIZES[i], SIZES[i + 1]
        key, kw, kb = jax.random.split(key, 3)
        bound = 1.0 / jnp.sqrt(jnp.float32(fan_in))
        w = jax.random.uniform(kw, (fan_in, fan_out), jnp.float32, -bound, bound)
        b = jax.random.uniform(kb, (1, fan_out), jnp.float32, -bound, bound)
        params.append((w, b))
    return params


def prepare_params(params, compute_dtype=jnp.bfloat16):
    """One-time wrapper-side prep: pad first/last layers to TPU-friendly shapes and
    cast weights to the MXU compute dtype. Biases stay f32 (added post-accumulate)."""
    prepared = []
    for i, (w, b) in enumerate(params):
        if i == 0 and w.shape[0] != PAD_IN:
            w = jnp.pad(w, ((0, PAD_IN - w.shape[0]), (0, 0)))          # zero rows
        if i == N_LAYERS - 1 and w.shape[1] != PAD_OUT:
            w = jnp.pad(w, ((0, 0), (0, PAD_OUT - w.shape[1])))         # zero cols
            b = jnp.pad(b, ((0, 0), (0, PAD_OUT - b.shape[1])))
        prepared.append((w.astype(compute_dtype), b.astype(jnp.float32)))
    return prepared


@functools.partial(jax.jit, static_argnames=("tb",))
def sdss_regressor(x, kparams, tb=512):
    """Forward pass. x: (B, 3) float32, kparams from prepare_params() -> (B, 5) f32.

    tb: batch tile. Default 512 (multiple of 256) so the dominant 128->256 and
    256->512 matmuls map onto full MXU tiles on v6e/v7x (and 128-multiples on v5e).
    For B >= 2*tb the grid has >= 2 "parallel" steps, so both v7x TensorCores run.
    """
    B, D = x.shape
    assert D == SIZES[0], "Input tensor does not match required dimensions"
    assert tb % 8 == 0
    assert kparams[0][0].shape[0] == PAD_IN, "params must come from prepare_params()"

    compute_dtype = kparams[0][0].dtype

    # Pad feature dim 3 -> 8 (W0 already carries matching zero rows) and cast once.
    x = jnp.pad(x, ((0, 0), (0, PAD_IN - D))).astype(compute_dtype)

    # Pad the batch to a multiple of the tile; shrink the tile for tiny batches.
    tb_eff = min(tb, _round_up(B, 8))
    B_pad = _round_up(B, tb_eff)
    if B_pad != B:
        x = jnp.pad(x, ((0, B_pad - B), (0, 0)))

    in_specs = [pl.BlockSpec((tb_eff, PAD_IN), lambda i: (i, 0))]
    flat_args = [x]
    for w, b in kparams:
        # Constant (0, 0) index_map: the weight/bias block stays resident in VMEM;
        # Pallas does not re-DMA blocks whose index does not change across steps.
        in_specs.append(pl.BlockSpec(w.shape, lambda i: (0, 0)))
        in_specs.append(pl.BlockSpec(b.shape, lambda i: (0, 0)))
        flat_args += [w, b]

    # Scheduler hint: ~177.2 KFLOP-pairs per row, tiny byte traffic.
    flops = 2 * B_pad * sum(SIZES[i] * SIZES[i + 1] for i in range(N_LAYERS))
    param_bytes = sum(
        w.size * w.dtype.itemsize + b.size * b.dtype.itemsize for w, b in kparams
    )
    bytes_accessed = x.size * x.dtype.itemsize + B_pad * PAD_OUT * 4 + param_bytes

    out = pl.pallas_call(
        mlp_kernel,
        out_shape=jax.ShapeDtypeStruct((B_pad, PAD_OUT), jnp.float32),
        grid=(B_pad // tb_eff,),
        in_specs=in_specs,
        out_specs=pl.BlockSpec((tb_eff, PAD_OUT), lambda i: (i, 0)),
        compiler_params=pltpu.CompilerParams(
            dimension_semantics=("parallel",),  # shard batch tiles across v7x's 2 TCs
        ),
        cost_estimate=pl.CostEstimate(
            flops=flops, transcendentals=0, bytes_accessed=bytes_accessed
        ),
    )(*flat_args)

    # Strip batch and lane padding (output cols 5..127 are exactly zero + zero bias).
    return out[:B, : SIZES[-1]]


def _reference_forward(x, params):
    """Plain-JAX f32 reference for correctness checking."""
    h = x
    for i, (w, b) in enumerate(params):
        h = h @ w + b
        if i < N_LAYERS - 1:
            h = jnp.maximum(h, 0.0)
    return h


if __name__ == "__main__":
    key = jax.random.PRNGKey(0)
    key, kx = jax.random.split(key)

    B = 64  # small example batch (production use: B >> tb, e.g. tens of thousands)
    x = jax.random.normal(kx, (B, SIZES[0]), jnp.float32)

    params = init_params(jax.random.PRNGKey(0))
    ref = _reference_forward(x, params)

    # 1) Exact-precision path (f32 weights end-to-end) -> tight tolerance.
    kparams_f32 = prepare_params(params, compute_dtype=jnp.float32)
    out_f32 = jax.block_until_ready(sdss_regressor(x, kparams_f32))
    assert out_f32.shape == (B, SIZES[-1])
    assert jnp.allclose(out_f32, ref, atol=1e-4, rtol=1e-4), "f32 mismatch vs reference"

    # 2) Fast path (bf16 weights/activations, f32 accumulation) -> loose tolerance.
    kparams_bf16 = prepare_params(params, compute_dtype=jnp.bfloat16)
    out_bf16 = jax.block_until_ready(sdss_regressor(x, kparams_bf16))
    assert out_bf16.shape == (B, SIZES[-1])
    assert jnp.allclose(out_bf16, ref, atol=5e-2, rtol=5e-2), "bf16 mismatch vs reference"

    print("KERNEL_OK")
</pallas_src>

<mosaic_0001>
module attributes {stable_mosaic.version = 11 : i64} {
  func.func @mlp_kernel(%arg0: i32, %arg1: memref<64x8xf32, #tpu.memory_space<vmem>>, %arg2: memref<8x16xf32, #tpu.memory_space<vmem>>, %arg3: memref<1x16xf32, #tpu.memory_space<vmem>>, %arg4: memref<16x32xf32, #tpu.memory_space<vmem>>, %arg5: memref<1x32xf32, #tpu.memory_space<vmem>>, %arg6: memref<32x64xf32, #tpu.memory_space<vmem>>, %arg7: memref<1x64xf32, #tpu.memory_space<vmem>>, %arg8: memref<64x128xf32, #tpu.memory_space<vmem>>, %arg9: memref<1x128xf32, #tpu.memory_space<vmem>>, %arg10: memref<128x256xf32, #tpu.memory_space<vmem>>, %arg11: memref<1x256xf32, #tpu.memory_space<vmem>>, %arg12: memref<256x512xf32, #tpu.memory_space<vmem>>, %arg13: memref<1x512xf32, #tpu.memory_space<vmem>>, %arg14: memref<512x128xf32, #tpu.memory_space<vmem>>, %arg15: memref<1x128xf32, #tpu.memory_space<vmem>>, %arg16: memref<64x128xf32, #tpu.memory_space<vmem>>) attributes {dimension_semantics = [#tpu.dimension_semantics<parallel>], iteration_bounds = array<i64: 1>, scalar_prefetch = 0 : i64, scratch_operands = 0 : i64, tpu.core_type = #tpu.core_type<tc>, window_params = [{transform_indices = @transform_0, window_bounds = array<i64: 64, 8>}, {pipeline_mode = #tpu.pipeline_mode<synchronous>, transform_indices = @transform_1, window_bounds = array<i64: 8, 16>}, {pipeline_mode = #tpu.pipeline_mode<synchronous>, transform_indices = @transform_2, window_bounds = array<i64: 1, 16>}, {pipeline_mode = #tpu.pipeline_mode<synchronous>, transform_indices = @transform_3, window_bounds = array<i64: 16, 32>}, {pipeline_mode = #tpu.pipeline_mode<synchronous>, transform_indices = @transform_4, window_bounds = array<i64: 1, 32>}, {pipeline_mode = #tpu.pipeline_mode<synchronous>, transform_indices = @transform_5, window_bounds = array<i64: 32, 64>}, {pipeline_mode = #tpu.pipeline_mode<synchronous>, transform_indices = @transform_6, window_bounds = array<i64: 1, 64>}, {pipeline_mode = #tpu.pipeline_mode<synchronous>, transform_indices = @transform_7, window_bounds = array<i64: 64, 128>}, {pipeline_mode = #tpu.pipeline_mode<synchronous>, transform_indices = @transform_8, window_bounds = array<i64: 1, 128>}, {pipeline_mode = #tpu.pipeline_mode<synchronous>, transform_indices = @transform_9, window_bounds = array<i64: 128, 256>}, {pipeline_mode = #tpu.pipeline_mode<synchronous>, transform_indices = @transform_10, window_bounds = array<i64: 1, 256>}, {pipeline_mode = #tpu.pipeline_mode<synchronous>, transform_indices = @transform_11, window_bounds = array<i64: 256, 512>}, {pipeline_mode = #tpu.pipeline_mode<synchronous>, transform_indices = @transform_12, window_bounds = array<i64: 1, 512>}, {pipeline_mode = #tpu.pipeline_mode<synchronous>, transform_indices = @transform_13, window_bounds = array<i64: 512, 128>}, {pipeline_mode = #tpu.pipeline_mode<synchronous>, transform_indices = @transform_14, window_bounds = array<i64: 1, 128>}, {transform_indices = @transform_15, window_bounds = array<i64: 64, 128>}]} {
    %c0 = arith.constant 0 : index
    %c0_0 = arith.constant 0 : index
    %0 = vector.load %arg1[%c0, %c0_0] : memref<64x8xf32, #tpu.memory_space<vmem>>, vector<64x8xf32>
    %c0_1 = arith.constant 0 : index
    %c0_2 = arith.constant 0 : index
    %1 = vector.load %arg2[%c0_1, %c0_2] : memref<8x16xf32, #tpu.memory_space<vmem>>, vector<8x16xf32>
    %c0_3 = arith.constant 0 : index
    %c0_4 = arith.constant 0 : index
    %2 = vector.load %arg3[%c0_3, %c0_4] : memref<1x16xf32, #tpu.memory_space<vmem>>, vector<1x16xf32>
    %cst = arith.constant dense<0.000000e+00> : vector<64x16xf32>
    %3 = tpu.matmul %0, %1, %cst {dimension_numbers = #tpu.dot_dimension_numbers<[1], [0], [0], [1], [0, 0, 1, 1], [], []>} : vector<64x8xf32>, vector<8x16xf32>, vector<64x16xf32> -> vector<64x16xf32>
    %4 = vector.broadcast %2 : vector<1x16xf32> to vector<64x16xf32>
    %5 = arith.addf %3, %4 : vector<64x16xf32>
    %cst_5 = arith.constant 0.000000e+00 : f32
    %6 = vector.broadcast %cst_5 : f32 to vector<64x16xf32>
    %7 = arith.maximumf %5, %6 : vector<64x16xf32>
    %c0_6 = arith.constant 0 : index
    %c0_7 = arith.constant 0 : index
    %8 = vector.load %arg4[%c0_6, %c0_7] : memref<16x32xf32, #tpu.memory_space<vmem>>, vector<16x32xf32>
    %c0_8 = arith.constant 0 : index
    %c0_9 = arith.constant 0 : index
    %9 = vector.load %arg5[%c0_8, %c0_9] : memref<1x32xf32, #tpu.memory_space<vmem>>, vector<1x32xf32>
    %cst_10 = arith.constant dense<0.000000e+00> : vector<64x32xf32>
    %10 = tpu.matmul %7, %8, %cst_10 {dimension_numbers = #tpu.dot_dimension_numbers<[1], [0], [0], [1], [0, 0, 1, 1], [], []>} : vector<64x16xf32>, vector<16x32xf32>, vector<64x32xf32> -> vector<64x32xf32>
    %11 = vector.broadcast %9 : vector<1x32xf32> to vector<64x32xf32>
    %12 = arith.addf %10, %11 : vector<64x32xf32>
    %cst_11 = arith.constant 0.000000e+00 : f32
    %13 = vector.broadcast %cst_11 : f32 to vector<64x32xf32>
    %14 = arith.maximumf %12, %13 : vector<64x32xf32>
    %c0_12 = arith.constant 0 : index
    %c0_13 = arith.constant 0 : index
    %15 = vector.load %arg6[%c0_12, %c0_13] : memref<32x64xf32, #tpu.memory_space<vmem>>, vector<32x64xf32>
    %c0_14 = arith.constant 0 : index
    %c0_15 = arith.constant 0 : index
    %16 = vector.load %arg7[%c0_14, %c0_15] : memref<1x64xf32, #tpu.memory_space<vmem>>, vector<1x64xf32>
    %cst_16 = arith.constant dense<0.000000e+00> : vector<64x64xf32>
    %17 = tpu.matmul %14, %15, %cst_16 {dimension_numbers = #tpu.dot_dimension_numbers<[1], [0], [0], [1], [0, 0, 1, 1], [], []>} : vector<64x32xf32>, vector<32x64xf32>, vector<64x64xf32> -> vector<64x64xf32>
    %18 = vector.broadcast %16 : vector<1x64xf32> to vector<64x64xf32>
    %19 = arith.addf %17, %18 : vector<64x64xf32>
    %cst_17 = arith.constant 0.000000e+00 : f32
    %20 = vector.broadcast %cst_17 : f32 to vector<64x64xf32>
    %21 = arith.maximumf %19, %20 : vector<64x64xf32>
    %c0_18 = arith.constant 0 : index
    %c0_19 = arith.constant 0 : index
    %22 = vector.load %arg8[%c0_18, %c0_19] : memref<64x128xf32, #tpu.memory_space<vmem>>, vector<64x128xf32>
    %c0_20 = arith.constant 0 : index
    %c0_21 = arith.constant 0 : index
    %23 = vector.load %arg9[%c0_20, %c0_21] : memref<1x128xf32, #tpu.memory_space<vmem>>, vector<1x128xf32>
    %cst_22 = arith.constant dense<0.000000e+00> : vector<64x128xf32>
    %24 = tpu.matmul %21, %22, %cst_22 {dimension_numbers = #tpu.dot_dimension_numbers<[1], [0], [0], [1], [0, 0, 1, 1], [], []>} : vector<64x64xf32>, vector<64x128xf32>, vector<64x128xf32> -> vector<64x128xf32>
    %25 = vector.broadcast %23 : vector<1x128xf32> to vector<64x128xf32>
    %26 = arith.addf %24, %25 : vector<64x128xf32>
    %cst_23 = arith.constant 0.000000e+00 : f32
    %27 = vector.broadcast %cst_23 : f32 to vector<64x128xf32>
    %28 = arith.maximumf %26, %27 : vector<64x128xf32>
    %c0_24 = arith.constant 0 : index
    %c0_25 = arith.constant 0 : index
    %29 = vector.load %arg10[%c0_24, %c0_25] : memref<128x256xf32, #tpu.memory_space<vmem>>, vector<128x256xf32>
    %c0_26 = arith.constant 0 : index
    %c0_27 = arith.constant 0 : index
    %30 = vector.load %arg11[%c0_26, %c0_27] : memref<1x256xf32, #tpu.memory_space<vmem>>, vector<1x256xf32>
    %cst_28 = arith.constant dense<0.000000e+00> : vector<64x256xf32>
    %31 = tpu.matmul %28, %29, %cst_28 {dimension_numbers = #tpu.dot_dimension_numbers<[1], [0], [0], [1], [0, 0, 1, 1], [], []>} : vector<64x128xf32>, vector<128x256xf32>, vector<64x256xf32> -> vector<64x256xf32>
    %32 = vector.broadcast %30 : vector<1x256xf32> to vector<64x256xf32>
    %33 = arith.addf %31, %32 : vector<64x256xf32>
    %cst_29 = arith.constant 0.000000e+00 : f32
    %34 = vector.broadcast %cst_29 : f32 to vector<64x256xf32>
    %35 = arith.maximumf %33, %34 : vector<64x256xf32>
    %c0_30 = arith.constant 0 : index
    %c0_31 = arith.constant 0 : index
    %36 = vector.load %arg12[%c0_30, %c0_31] : memref<256x512xf32, #tpu.memory_space<vmem>>, vector<256x512xf32>
    %c0_32 = arith.constant 0 : index
    %c0_33 = arith.constant 0 : index
    %37 = vector.load %arg13[%c0_32, %c0_33] : memref<1x512xf32, #tpu.memory_space<vmem>>, vector<1x512xf32>
    %cst_34 = arith.constant dense<0.000000e+00> : vector<64x512xf32>
    %38 = tpu.matmul %35, %36, %cst_34 {dimension_numbers = #tpu.dot_dimension_numbers<[1], [0], [0], [1], [0, 0, 1, 1], [], []>} : vector<64x256xf32>, vector<256x512xf32>, vector<64x512xf32> -> vector<64x512xf32>
    %39 = vector.broadcast %37 : vector<1x512xf32> to vector<64x512xf32>
    %40 = arith.addf %38, %39 : vector<64x512xf32>
    %cst_35 = arith.constant 0.000000e+00 : f32
    %41 = vector.broadcast %cst_35 : f32 to vector<64x512xf32>
    %42 = arith.maximumf %40, %41 : vector<64x512xf32>
    %c0_36 = arith.constant 0 : index
    %c0_37 = arith.constant 0 : index
    %43 = vector.load %arg14[%c0_36, %c0_37] : memref<512x128xf32, #tpu.memory_space<vmem>>, vector<512x128xf32>
    %c0_38 = arith.constant 0 : index
    %c0_39 = arith.constant 0 : index
    %44 = vector.load %arg15[%c0_38, %c0_39] : memref<1x128xf32, #tpu.memory_space<vmem>>, vector<1x128xf32>
    %cst_40 = arith.constant dense<0.000000e+00> : vector<64x128xf32>
    %45 = tpu.matmul %42, %43, %cst_40 {dimension_numbers = #tpu.dot_dimension_numbers<[1], [0], [0], [1], [0, 0, 1, 1], [], []>} : vector<64x512xf32>, vector<512x128xf32>, vector<64x128xf32> -> vector<64x128xf32>
    %46 = vector.broadcast %44 : vector<1x128xf32> to vector<64x128xf32>
    %47 = arith.addf %45, %46 : vector<64x128xf32>
    %c0_41 = arith.constant 0 : index
    %c0_42 = arith.constant 0 : index
    %48 = vector.load %arg16[%c0_41, %c0_42] : memref<64x128xf32, #tpu.memory_space<vmem>>, vector<64x128xf32>
    tpu.vector_store %arg16[%c0_41, %c0_42], %47 {strides = array<i32>} : memref<64x128xf32, #tpu.memory_space<vmem>>, vector<64x128xf32>,
    return
  }
  func.func @transform_0(%arg0: i32) -> (i32, i32) {
    %c0_i32 = arith.constant 0 : i32
    %c0_i32_0 = arith.constant 0 : i32
    return %arg0, %c0_i32 : i32, i32
  }
  func.func @transform_1(%arg0: i32) -> (i32, i32) {
    %c0_i32 = arith.constant 0 : i32
    %c0_i32_0 = arith.constant 0 : i32
    %c0_i32_1 = arith.constant 0 : i32
    return %c0_i32, %c0_i32_0 : i32, i32
  }
  func.func @transform_2(%arg0: i32) -> (i32, i32) {
    %c0_i32 = arith.constant 0 : i32
    %c0_i32_0 = arith.constant 0 : i32
    %c0_i32_1 = arith.constant 0 : i32
    return %c0_i32, %c0_i32_0 : i32, i32
  }
  func.func @transform_3(%arg0: i32) -> (i32, i32) {
    %c0_i32 = arith.constant 0 : i32
    %c0_i32_0 = arith.constant 0 : i32
    %c0_i32_1 = arith.constant 0 : i32
    return %c0_i32, %c0_i32_0 : i32, i32
  }
  func.func @transform_4(%arg0: i32) -> (i32, i32) {
    %c0_i32 = arith.constant 0 : i32
    %c0_i32_0 = arith.constant 0 : i32
    %c0_i32_1 = arith.constant 0 : i32
    return %c0_i32, %c0_i32_0 : i32, i32
  }
  func.func @transform_5(%arg0: i32) -> (i32, i32) {
    %c0_i32 = arith.constant 0 : i32
    %c0_i32_0 = arith.constant 0 : i32
    %c0_i32_1 = arith.constant 0 : i32
    return %c0_i32, %c0_i32_0 : i32, i32
  }
  func.func @transform_6(%arg0: i32) -> (i32, i32) {
    %c0_i32 = arith.constant 0 : i32
    %c0_i32_0 = arith.constant 0 : i32
    %c0_i32_1 = arith.constant 0 : i32
    return %c0_i32, %c0_i32_0 : i32, i32
  }
  func.func @transform_7(%arg0: i32) -> (i32, i32) {
    %c0_i32 = arith.constant 0 : i32
    %c0_i32_0 = arith.constant 0 : i32
    %c0_i32_1 = arith.constant 0 : i32
    return %c0_i32, %c0_i32_0 : i32, i32
  }
  func.func @transform_8(%arg0: i32) -> (i32, i32) {
    %c0_i32 = arith.constant 0 : i32
    %c0_i32_0 = arith.constant 0 : i32
    %c0_i32_1 = arith.constant 0 : i32
    return %c0_i32, %c0_i32_0 : i32, i32
  }
  func.func @transform_9(%arg0: i32) -> (i32, i32) {
    %c0_i32 = arith.constant 0 : i32
    %c0_i32_0 = arith.constant 0 : i32
    %c0_i32_1 = arith.constant 0 : i32
    return %c0_i32, %c0_i32_0 : i32, i32
  }
  func.func @transform_10(%arg0: i32) -> (i32, i32) {
    %c0_i32 = arith.constant 0 : i32
    %c0_i32_0 = arith.constant 0 : i32
    %c0_i32_1 = arith.constant 0 : i32
    return %c0_i32, %c0_i32_0 : i32, i32
  }
  func.func @transform_11(%arg0: i32) -> (i32, i32) {
    %c0_i32 = arith.constant 0 : i32
    %c0_i32_0 = arith.constant 0 : i32
    %c0_i32_1 = arith.constant 0 : i32
    return %c0_i32, %c0_i32_0 : i32, i32
  }
  func.func @transform_12(%arg0: i32) -> (i32, i32) {
    %c0_i32 = arith.constant 0 : i32
    %c0_i32_0 = arith.constant 0 : i32
    %c0_i32_1 = arith.constant 0 : i32
    return %c0_i32, %c0_i32_0 : i32, i32
  }
  func.func @transform_13(%arg0: i32) -> (i32, i32) {
    %c0_i32 = arith.constant 0 : i32
    %c0_i32_0 = arith.constant 0 : i32
    %c0_i32_1 = arith.constant 0 : i32
    return %c0_i32, %c0_i32_0 : i32, i32
  }
  func.func @transform_14(%arg0: i32) -> (i32, i32) {
    %c0_i32 = arith.constant 0 : i32
    %c0_i32_0 = arith.constant 0 : i32
    %c0_i32_1 = arith.constant 0 : i32
    return %c0_i32, %c0_i32_0 : i32, i32
  }
  func.func @transform_15(%arg0: i32) -> (i32, i32) {
    %c0_i32 = arith.constant 0 : i32
    %c0_i32_0 = arith.constant 0 : i32
    return %arg0, %c0_i32 : i32, i32
  }
}

</mosaic_0001>

<bundles_post_ra>
// kernel: sdss_regressor.1
= control target key start
LH: loop header
LB: loop body
LE: loop exit
PB: predicated region body
PF: predicated region fallthrough
CT: control target
= control target key end

     0   :  { %20 = vsyncpa [#allocation3], 0  ;;  %s2265_s0 = inlined_call_operand.vmem [shape: f32[64,8], index: 0, kind: input, shape index: {}]   ;;  %s2266_s1 = inlined_call_operand.vmem [shape: f32[8,16], index: 1, kind: input, shape index: {}]   ;;  %s2267_s2 = inlined_call_operand.vmem [shape: f32[1,16], index: 2, kind: input, shape index: {}]   ;;  %s2268_s3 = inlined_call_operand.vmem [shape: f32[16,32], index: 3, kind: input, shape index: {}]   ;;  %s2269_s4 = inlined_call_operand.vmem [shape: f32[1,32], index: 4, kind: input, shape index: {}]   ;;  %s2270_s5 = inlined_call_operand.vmem [shape: f32[32,64], index: 5, kind: input, shape index: {}]   ;;  %s2271_s6 = inlined_call_operand.vmem [shape: f32[1,64], index: 6, kind: input, shape index: {}]   ;;  %s2272_s7 = inlined_call_operand.vmem [shape: f32[64,128], index: 7, kind: input, shape index: {}]   ;;  %s2273_s8 = inlined_call_operand.vmem [shape: f32[1,128], index: 8, kind: input, shape index: {}]   ;;  %s2274_s9 = inlined_call_operand.hbm [shape: f32[128,256], index: 9, kind: input, shape index: {}]   ;;  %s2275_s10 = inlined_call_operand.vmem [shape: f32[1,256], index: 10, kind: input, shape index: {}]   ;;  %s2276_s11 = inlined_call_operand.hbm [shape: f32[256,512], index: 11, kind: input, shape index: {}]   ;;  %s2277_s12 = inlined_call_operand.vmem [shape: f32[1,512], index: 12, kind: input, shape index: {}]   ;;  %s2278_s13 = inlined_call_operand.hbm [shape: f32[512,128], index: 13, kind: input, shape index: {}]   ;;  %s2279_s14 = inlined_call_operand.vmem [shape: f32[1,128], index: 14, kind: input, shape index: {}]   ;;  %s2280_s15 = inlined_call_operand.vmem [shape: f32[64,128], index: 15, kind: output, shape index: {}]  }
   0x1   :  { %21 = vsyncpa [#allocation5], 0  ;;  %s1918_s18 = smov [#allocation4]  }
   0x2   :  { %s59_s19 = sshll.u32 %s1918_s18, 4  ;;  %s60_s19 = int_to_ptr.vmem [resolvable:$true] %s59_s19 }
   0x3   :  { %s1862_s20 = scalar_lea.vmem %s60_s19, 16384  ;;  %p1867_p1 = scmp.lt.s32.totalorder %s60_s19, %s60_s19 }
   0x4   :  { %p1863_p0 = scmp.ne.s32.totalorder %s60_s19, %s1862_s20  ;;  %p1868_p2 = scmp.lt.s32.totalorder %s1862_s20, %s1862_s20 }
   0x6   :  { %p1869_p3 = por %p1868_p2, %p1867_p1 }
   0x8   :  { %p1870_p4 = pnand %p1869_p3, %p1863_p0 }
   0xa   :  { %1873 = shalt.err (!%p1870_p4)
}
   0xb   :  { %s1919_s21 = smov 512   ;;  %s1920_s22 = smov 32  }
   0xc   :  { %65 = dma.hbm_to_vmem [thread:$0]  %s2276_s11, 16384, %s60_s19, [#allocation5], %s1919_s21, %s1919_s21, %s1920_s22  }
   0xd   :  { %s1921_s25 = smov [#allocation2]  }
   0xe   :  { %s45_s26 = sshll.u32 %s1921_s25, 4  ;;  %s46_s26 = int_to_ptr.vmem [resolvable:$true] %s45_s26 }
   0xf   :  { %s1882_s27 = scalar_lea.vmem %s46_s26, 4096  ;;  %p1887_p6 = scmp.lt.s32.totalorder %s46_s26, %s46_s26 }
  0x10   :  { %p1883_p5 = scmp.ne.s32.totalorder %s46_s26, %s1882_s27  ;;  %p1888_p7 = scmp.lt.s32.totalorder %s1882_s27, %s1882_s27 }
  0x12   :  { %p1889_p8 = por %p1888_p7, %p1887_p6 }
  0x14   :  { %p1890_p9 = pnand %p1889_p8, %p1883_p5 }
  0x16   :  { %1893 = shalt.err (!%p1890_p9)
}
  0x17   :  { %s1922_s28 = smov 256   ;;  %s1923_s29 = smov 16  }
  0x18   :  { %51 = dma.hbm_to_vmem [thread:$0]  %s2274_s9, 4096, %s46_s26, [#allocation3], %s1922_s28, %s1922_s28, %s1923_s29  }
  0x19   :  { %s1924_s17 = smov [#allocation6]  }
  0x1a   :  { %s73_s18 = sshll.u32 %s1924_s17, 4  ;;  %s74_s18 = int_to_ptr.vmem [resolvable:$true] %s73_s18 }
  0x1b   :  { %s1902_s11 = scalar_lea.vmem %s74_s18, 8192  ;;  %p1907_p11 = scmp.lt.s32.totalorder %s74_s18, %s74_s18 }
  0x1c   :  { %p1903_p10 = scmp.ne.s32.totalorder %s74_s18, %s1902_s11  ;;  %p1908_p12 = scmp.lt.s32.totalorder %s1902_s11, %s1902_s11 }
  0x1e   :  { %p1909_p13 = por %p1908_p12, %p1907_p11 }
  0x20   :  { %p1910_p0 = pnand %p1909_p13, %p1903_p10 }
  0x22   :  { %1913 = shalt.err (!%p1910_p0)
}
  0x23   :  { %s1925_s19 = smov 128   ;;  %s1926_s20 = smov 8  }
  0x24   :  { %79 = dma.hbm_to_vmem [thread:$0]  %s2278_s13, 8192, %s74_s18, [#allocation5], %s1925_s19, %s1925_s19, %s1926_s20  }
  0x25   :  { %1914 = dma.done.wait [#allocation3], 4096  }
  0x26   :  { %1915 = vsyncadd [#allocation3], 4294963200 }
  0x27   :  { %1916 = dma.done.wait [#allocation5], 24576  }
  0x28   :  { %1917 = vsyncadd [#allocation5], 4294942720  ;;  %vm107_vm0 = vcmask 64512   ;;  %v99_v0 = vld [vmem:[%s2266_s1] sm:$0xff]  ;;  %v92_v2 = vld [vmem:[%s2265_s0 + $0x8] sm:$0xff]  ;;  %vm254_vm1 = vcmask 130048  }
  0x29   :  { %v91_v1 = vld [vmem:[%s2265_s0] sm:$0xff]  ;;  %1766 = vmatprep.subr.mxu0 %v99_v0  ;;  %v93_v3 = vld [vmem:[%s2265_s0 + $0x10] sm:$0xff]  ;;  %v94_v4 = vld [vmem:[%s2265_s0 + $0x18] sm:$0xff]  ;;  %vm403_vm2 = vcmask 261120   ;;  %vm556_vm3 = vcmask 523264  }
  0x2a   :  { %1768 = vmatprep.mubr.msk.f32.mxu0 %vm107_vm0, %v91_v1  ;;  %1767 = vmatpush3.msra.mxu0 %v99_v0  ;;  %v95_v5 = vld [vmem:[%s2265_s0 + $0x20] sm:$0xff]  ;;  %v96_v6 = vld [vmem:[%s2265_s0 + $0x28] sm:$0xff]  ;;  %v97_v7 = vld [vmem:[%s2265_s0 + $0x30] sm:$0xff] }
  0x2b   :  { %1769 = vmatmul.mubr.msk.f32.vlgmr.msra.gmra.mxu0 %vm107_vm0, %v92_v2  ;;  %v98_v8 = vld [vmem:[%s2265_s0 + $0x38] sm:$0xff]  ;;  %v246_v9 = vld [vmem:[%s2268_s3 + $0x8] sm:$0xff]  ;;  %v245_v10 = vld [vmem:[%s2268_s3] sm:$0xff] }
  0x2c   :  { %1771 = vmatprep.mubr.msk.f32.mxu0 %vm107_vm0, %v93_v3  ;;  %1780 = vmatprep.subr.mxu1 %v246_v9  ;;  %v395_v11 = vld [vmem:[%s2270_s5 + $0x18] sm:$0xff]  ;;  %v1570_v12 = vld [vmem:[%s2267_s2] ss:$0 sm:$0xff]  ;;  %v394_v23 = vld [vmem:[%s2270_s5 + $0x10] sm:$0xff] }
  0x2d   :  { %1781 = vmatpush3.msra.mxu1 %v246_v9  ;;  %v393_v28 = vld [vmem:[%s2270_s5 + $0x8] sm:$0xff]  ;;  %v392_v39 = vld [vmem:[%s2270_s5] sm:$0xff]  ;;  %v548_v40 = vld [vmem:[%s2272_s7 + $0x38] sm:$0xff] }
  0x2e   :  { %1782 = vmatprep.subr.mxu1 %v245_v10  ;;  %v1579_v41 = vld [vmem:[%s2269_s4] ss:$0 sm:$0xff]  ;;  %v547_v52 = vld [vmem:[%s2272_s7 + $0x30] sm:$0xff]  ;;  %v546_v56 = vld [vmem:[%s2272_s7 + $0x28] sm:$0xff] }
  0x2f   :  { %1772 = vmatmul.mubr.msk.f32.gmra.mxu0 %vm107_vm0, %v94_v4  ;;  %1783 = vmatpush3.msra.mxu1 %v245_v10  ;;  %v545_v60 = vld [vmem:[%s2272_s7 + $0x20] sm:$0xff]  ;;  %v544_v1 = vld [vmem:[%s2272_s7 + $0x18] sm:$0xff]  ;;  %v724_v10 = vld [vmem:[#allocation2 + $0xf0] sm:$0xff] }
  0x30   :  { %1774 = vmatprep.mubr.msk.f32.mxu0 %vm107_vm0, %v95_v5  ;;  %1796 = vmatprep.subr.mxu1 %v395_v11  ;;  %v725_v9 = vld [vmem:[#allocation2 + $0xf8] sm:$0xff] }
  0x31   :  { %738 = vmatprep.subr.mxu0 %v725_v9  ;;  %v919_v9 = vld [vmem:[#allocation4 + $0x1a0] sm:$0xff] }
  0x32   :  { %739 = vmatpush1.msra.mxu0 %v724_v10  ;;  %v916_v10 = vld [vmem:[#allocation4 + $0x188] sm:$0xff] }
  0x33   :  { %1775 = vmatmul.mubr.msk.f32.gmra.mxu0 %vm107_vm0, %v96_v6  ;;  %v543_v6 = vld [vmem:[%s2272_s7 + $0x10] sm:$0xff] }
  0x34   :  { %1777 = vmatprep.mubr.msk.f32.mxu0 %vm107_vm0, %v97_v7  ;;  %v542_v7 = vld [vmem:[%s2272_s7 + $0x8] sm:$0xff] }
  0x37   :  { %1778 = vmatmul.mubr.msk.f32.gmra.mxu0 %vm107_vm0, %v98_v8  ;;  %v541_v8 = vld [vmem:[%s2272_s7] sm:$0xff] }
  0xeb   :  { %v1770_v13 = vpop.f32.mrf.mxu0 }
  0xec   :  { %v204_v14 = vadd.f32 %v1770_v13, %v1570_v12  ;;  %v721_v13 = vld [vmem:[#allocation2 + $0xd8] sm:$0xff] }
  0xed   :  { %v198_v15 = vpop.f32.mrf.mxu0 }
  0xee   :  { %v199_v16 = vadd.f32 %v1570_v12, %v198_v15  ;;  %v238_v20 = vmax.f32 %v204_v14, 0.0  ;;  %v720_v14 = vld [vmem:[#allocation2 + $0xd0] sm:$0xff]  ;;  %v719_v15 = vld [vmem:[#allocation2 + $0xc8] sm:$0xff] }
  0xef   :  { %v1773_v17 = vpop.f32.mrf.mxu0 }
  0xf0   :  { %v237_v18 = vmax.f32 %v199_v16, 0.0  ;;  %v214_v19 = vadd.f32 %v1773_v17, %v1570_v12  ;;  %v718_v16 = vld [vmem:[#allocation2 + $0xc0] sm:$0xff]  ;;  %v717_v17 = vld [vmem:[#allocation2 + $0xb8] sm:$0xff] }
  0xf1   :  { %v208_v21 = vpop.f32.mrf.mxu0 }
  0xf2   :  { %v209_v22 = vadd.f32 %v1570_v12, %v208_v21  ;;  %1784 = vmatprep.mubr.msk.f32.mxu1 %vm254_vm1, %v237_v18  ;;  %v240_v24 = vmax.f32 %v214_v19, 0.0  ;;  %v716_v18 = vld [vmem:[#allocation2 + $0xb0] sm:$0xff]  ;;  %v715_v19 = vld [vmem:[#allocation2 + $0xa8] sm:$0xff]  ;;  %v713_v21 = vld [vmem:[#allocation2 + $0x98] sm:$0xff] }
  0xf3   :  { %v1776_v25 = vpop.f32.mrf.mxu0  ;;  %1785 = vmatmul.mubr.msk.f32.vlgmr.msra.gmra.mxu1 %vm254_vm1, %v238_v20  ;;  %v714_v20 = vld [vmem:[#allocation2 + $0xa0] sm:$0xff] }
  0xf4   :  { %v239_v26 = vmax.f32 %v209_v22, 0.0  ;;  %v224_v27 = vadd.f32 %v1776_v25, %v1570_v12  ;;  %1797 = vmatpush3.msra.mxu1 %v395_v11  ;;  %v723_v11 = vld [vmem:[#allocation2 + $0xe8] sm:$0xff]  ;;  %v712_v22 = vld [vmem:[#allocation2 + $0x90] sm:$0xff]  ;;  %v709_v25 = vld [vmem:[#allocation2 + $0x78] sm:$0xff] }
  0xf5   :  { %v218_v29 = vpop.f32.mrf.mxu0  ;;  %1798 = vmatprep.subr.mxu1 %v394_v23  ;;  %740 = vmatprep.subr.mxu0 %v723_v11  ;;  %v915_v11 = vld [vmem:[#allocation4 + $0x180] sm:$0xff] }
  0xf6   :  { %v219_v30 = vadd.f32 %v1570_v12, %v218_v29  ;;  %1787 = vmatprep.mubr.msk.f32.mxu1 %vm254_vm1, %v239_v26  ;;  %1799 = vmatpush3.msra.mxu1 %v394_v23  ;;  %v242_v31 = vmax.f32 %v224_v27, 0.0  ;;  %v711_v23 = vld [vmem:[#allocation2 + $0x88] sm:$0xff]  ;;  %v708_v26 = vld [vmem:[#allocation2 + $0x70] sm:$0xff]  ;;  %v705_v29 = vld [vmem:[#allocation2 + $0x58] sm:$0xff] }
  0xf7   :  { %1788 = vmatmul.mubr.msk.f32.gmra.mxu1 %vm254_vm1, %v240_v24  ;;  %v1779_v32 = vpop.f32.mrf.mxu0  ;;  %1800 = vmatprep.subr.mxu1 %v393_v28  ;;  %v710_v24 = vld [vmem:[#allocation2 + $0x80] sm:$0xff]  ;;  %v707_v27 = vld [vmem:[#allocation2 + $0x68] sm:$0xff] }
  0xf8   :  { %v241_v33 = vmax.f32 %v219_v30, 0.0  ;;  %v234_v34 = vadd.f32 %v1779_v32, %v1570_v12  ;;  %1801 = vmatpush3.msra.mxu1 %v393_v28  ;;  %v706_v28 = vld [vmem:[#allocation2 + $0x60] sm:$0xff]  ;;  %v704_v30 = vld [vmem:[#allocation2 + $0x50] sm:$0xff] }
  0xf9   :  { %v228_v35 = vpop.f32.mrf.mxu0  ;;  %1802 = vmatprep.subr.mxu1 %v392_v39  ;;  %v702_v32 = vld [vmem:[#allocation2 + $0x40] sm:$0xff] }
  0xfa   :  { %v229_v36 = vadd.f32 %v1570_v12, %v228_v35  ;;  %1790 = vmatprep.mubr.msk.f32.mxu1 %vm254_vm1, %v241_v33  ;;  %v244_v37 = vmax.f32 %v234_v34, 0.0  ;;  %1803 = vmatpush3.msra.mxu1 %v392_v39  ;;  %v722_v12 = vld [vmem:[#allocation2 + $0xe0] sm:$0xff]  ;;  %v701_v33 = vld [vmem:[#allocation2 + $0x38] sm:$0xff] }
  0xfb   :  { %1791 = vmatmul.mubr.msk.f32.gmra.mxu1 %vm254_vm1, %v242_v31  ;;  %1816 = vmatprep.subr.mxu1 %v548_v40  ;;  %v703_v31 = vld [vmem:[#allocation2 + $0x48] sm:$0xff]  ;;  %v1588_v34 = vld [vmem:[%s2271_s6] ss:$0 sm:$0xff] }
  0xfc   :  { %v243_v38 = vmax.f32 %v229_v36, 0.0  ;;  %741 = vmatpush1.msra.mxu0 %v722_v12  ;;  %v912_v12 = vld [vmem:[#allocation4 + $0x168] sm:$0xff] }
  0xfd   :  { %742 = vmatprep.subr.mxu0 %v721_v13  ;;  %v911_v13 = vld [vmem:[#allocation4 + $0x160] sm:$0xff] }
  0xfe   :  { %1793 = vmatprep.mubr.msk.f32.mxu1 %vm254_vm1, %v243_v38  ;;  %743 = vmatpush1.msra.mxu0 %v720_v14  ;;  %v908_v14 = vld [vmem:[#allocation4 + $0x148] sm:$0xff] }
  0xff   :  { %1794 = vmatmul.mubr.msk.f32.gmra.mxu1 %vm254_vm1, %v244_v37  ;;  %744 = vmatprep.subr.mxu0 %v719_v15  ;;  %v907_v15 = vld [vmem:[#allocation4 + $0x140] sm:$0xff] }
 0x100   :  { %745 = vmatpush1.msra.mxu0 %v718_v16  ;;  %v904_v16 = vld [vmem:[#allocation4 + $0x128] sm:$0xff] }
 0x101   :  { %746 = vmatprep.subr.mxu0 %v717_v17  ;;  %v903_v17 = vld [vmem:[#allocation4 + $0x120] sm:$0xff] }
 0x102   :  { %747 = vmatpush1.msra.mxu0 %v716_v18  ;;  %v900_v18 = vld [vmem:[#allocation4 + $0x108] sm:$0xff] }
 0x103   :  { %748 = vmatprep.subr.mxu0 %v715_v19  ;;  %v899_v19 = vld [vmem:[#allocation4 + $0x100] sm:$0xff] }
 0x104   :  { %749 = vmatpush1.msra.mxu0 %v714_v20  ;;  %v896_v20 = vld [vmem:[#allocation4 + $0xe8] sm:$0xff] }
 0x105   :  { %750 = vmatprep.subr.mxu0 %v713_v21  ;;  %v895_v21 = vld [vmem:[#allocation4 + $0xe0] sm:$0xff] }
 0x106   :  { %751 = vmatpush1.msra.mxu0 %v712_v22  ;;  %v892_v22 = vld [vmem:[#allocation4 + $0xc8] sm:$0xff] }
 0x107   :  { %752 = vmatprep.subr.mxu0 %v711_v23  ;;  %v891_v23 = vld [vmem:[#allocation4 + $0xc0] sm:$0xff] }
 0x108   :  { %753 = vmatpush1.msra.mxu0 %v710_v24  ;;  %v888_v24 = vld [vmem:[#allocation4 + $0xa8] sm:$0xff] }
 0x109   :  { %754 = vmatprep.subr.mxu0 %v709_v25  ;;  %v887_v25 = vld [vmem:[#allocation4 + $0xa0] sm:$0xff] }
 0x10a   :  { %755 = vmatpush1.msra.mxu0 %v708_v26  ;;  %v884_v26 = vld [vmem:[#allocation4 + $0x88] sm:$0xff] }
 0x10b   :  { %756 = vmatprep.subr.mxu0 %v707_v27  ;;  %v883_v27 = vld [vmem:[#allocation4 + $0x80] sm:$0xff] }
 0x10c   :  { %757 = vmatpush1.msra.mxu0 %v706_v28  ;;  %v880_v28 = vld [vmem:[#allocation4 + $0x68] sm:$0xff] }
 0x10d   :  { %758 = vmatprep.subr.mxu0 %v705_v29  ;;  %v879_v29 = vld [vmem:[#allocation4 + $0x60] sm:$0xff] }
 0x10e   :  { %759 = vmatpush1.msra.mxu0 %v704_v30  ;;  %v876_v30 = vld [vmem:[#allocation4 + $0x48] sm:$0xff] }
 0x10f   :  { %760 = vmatprep.subr.mxu0 %v703_v31  ;;  %v875_v31 = vld [vmem:[#allocation4 + $0x40] sm:$0xff] }
 0x110   :  { %761 = vmatpush1.msra.mxu0 %v702_v32  ;;  %v872_v32 = vld [vmem:[#allocation4 + $0x28] sm:$0xff] }
 0x111   :  { %762 = vmatprep.subr.mxu0 %v701_v33  ;;  %v871_v33 = vld [vmem:[#allocation4 + $0x20] sm:$0xff] }
 0x1b3   :  { %v1786_v42 = vpop.f32.mrf.mxu1 }
 0x1b4   :  { %v351_v43 = vadd.f32 %v1786_v42, %v1579_v41 }
 0x1b5   :  { %v345_v44 = vpop.f32.mrf.mxu1 }
 0x1b6   :  { %v346_v45 = vadd.f32 %v1579_v41, %v345_v44  ;;  %v385_v48 = vmax.f32 %v351_v43, 0.0 }
 0x1b7   :  { %v1789_v46 = vpop.f32.mrf.mxu1 }
 0x1b8   :  { %v384_v47 = vmax.f32 %v346_v45, 0.0  ;;  %v361_v49 = vadd.f32 %v1789_v46, %v1579_v41 }
 0x1b9   :  { %v355_v50 = vpop.f32.mrf.mxu1 }
 0x1ba   :  { %v356_v51 = vadd.f32 %v1579_v41, %v355_v50  ;;  %1804 = vmatprep.mubr.msk.f32.mxu1 %vm403_vm2, %v384_v47  ;;  %v387_v57 = vmax.f32 %v361_v49, 0.0 }
 0x1bb   :  { %v1792_v53 = vpop.f32.mrf.mxu1  ;;  %1805 = vmatmul.mubr.msk.f32.vlgmr.msra.gmra.mxu1 %vm403_vm2, %v385_v48 }
 0x1bc   :  { %v386_v54 = vmax.f32 %v356_v51, 0.0  ;;  %v371_v55 = vadd.f32 %v1792_v53, %v1579_v41  ;;  %1817 = vmatpush3.msra.mxu1 %v548_v40 }
 0x1bd   :  { %v365_v58 = vpop.f32.mrf.mxu1  ;;  %1818 = vmatprep.subr.mxu1 %v547_v52 }
 0x1be   :  { %v366_v59 = vadd.f32 %v1579_v41, %v365_v58  ;;  %1807 = vmatprep.mubr.msk.f32.mxu1 %vm403_vm2, %v386_v54  ;;  %1819 = vmatpush3.msra.mxu1 %v547_v52  ;;  %v389_v61 = vmax.f32 %v371_v55, 0.0 }
 0x1bf   :  { %1808 = vmatmul.mubr.msk.f32.gmra.mxu1 %vm403_vm2, %v387_v57  ;;  %v1795_v62 = vpop.f32.mrf.mxu1  ;;  %1820 = vmatprep.subr.mxu1 %v546_v56 }
 0x1c0   :  { %v388_v63 = vmax.f32 %v366_v59, 0.0  ;;  %v381_v0 = vadd.f32 %v1795_v62, %v1579_v41  ;;  %1821 = vmatpush3.msra.mxu1 %v546_v56  ;;  %v700_v59 = vld [vmem:[#allocation2 + $0x30] sm:$0xff]  ;;  %v697_v62 = vld [vmem:[#allocation2 + $0x18] sm:$0xff] }
 0x1c1   :  { %v375_v2 = vpop.f32.mrf.mxu1  ;;  %1822 = vmatprep.subr.mxu1 %v545_v60  ;;  %763 = vmatpush1.msra.mxu0 %v700_v59  ;;  %v947_v59 = vld [vmem:[#allocation4 + $0x280] sm:$0xff] }
 0x1c2   :  { %v376_v3 = vadd.f32 %v1579_v41, %v375_v2  ;;  %1810 = vmatprep.mubr.msk.f32.mxu1 %vm403_vm2, %v388_v63  ;;  %1823 = vmatpush3.msra.mxu1 %v545_v60  ;;  %v391_v4 = vmax.f32 %v381_v0, 0.0  ;;  %v699_v60 = vld [vmem:[#allocation2 + $0x28] sm:$0xff]  ;;  %v696_v63 = vld [vmem:[#allocation2 + $0x10] sm:$0xff]  ;;  %v1927_v2 = vmov 0.0  }
 0x1c3   :  { %1811 = vmatmul.mubr.msk.f32.gmra.mxu1 %vm403_vm2, %v389_v61  ;;  %1824 = vmatprep.subr.mxu1 %v544_v1  ;;  %v698_v61 = vld [vmem:[#allocation2 + $0x20] sm:$0xff]  ;;  %v695_v0 = vld [vmem:[#allocation2 + $0x8] sm:$0xff] }
 0x1c4   :  { %v390_v5 = vmax.f32 %v376_v3, 0.0  ;;  %1825 = vmatpush3.msra.mxu1 %v544_v1  ;;  %764 = vmatprep.subr.mxu0 %v699_v60  ;;  %v694_v1 = vld [vmem:[#allocation2] sm:$0xff]  ;;  %v928_v3 = vld [vmem:[#allocation4 + $0x1e8] sm:$0xff] }
 0x1c5   :  { %1826 = vmatprep.subr.mxu1 %v543_v6  ;;  %765 = vmatpush1.msra.mxu0 %v698_v61  ;;  %v2131_v61 = vld [vmem:[%s2273_s8] ss:$0 sm:$0xff] }
 0x1c6   :  { %1813 = vmatprep.mubr.msk.f32.mxu1 %vm403_vm2, %v390_v5  ;;  %1827 = vmatpush3.msra.mxu1 %v543_v6  ;;  %v927_v5 = vld [vmem:[#allocation4 + $0x1e0] sm:$0xff]  ;;  %v924_v6 = vld [vmem:[#allocation4 + $0x1c8] sm:$0xff] }
 0x1c7   :  { %1814 = vmatmul.mubr.msk.f32.gmra.mxu1 %vm403_vm2, %v391_v4  ;;  %1828 = vmatprep.subr.mxu1 %v542_v7  ;;  %v930_v4 = vld [vmem:[#allocation4 + $0x1f8] sm:$0xff] }
 0x1c8   :  { %1829 = vmatpush3.msra.mxu1 %v542_v7  ;;  %766 = vmatprep.subr.mxu0 %v697_v62  ;;  %v923_v7 = vld [vmem:[#allocation4 + $0x1c0] sm:$0xff] }
 0x1c9   :  { %1830 = vmatprep.subr.mxu1 %v541_v8  ;;  %767 = vmatpush1.msra.mxu0 %v696_v63 }
 0x1ca   :  { %1831 = vmatpush3.msra.mxu1 %v541_v8  ;;  %768 = vmatprep.subr.mxu0 %v695_v0  ;;  %v920_v8 = vld [vmem:[#allocation4 + $0x1a8] sm:$0xff] }
 0x1cb   :  { %769 = vmatpush1.msra.mxu0 %v694_v1  ;;  %802 = vmatprep.mubr.f32.mxu0 %v1927_v2 }
 0x1cc   :  { %1017 = vmatprep.subr.mxu1 %v928_v3  ;;  %1130 = vmatprep.subr.mxu0 %v930_v4  ;;  %v929_v4 = vld [vmem:[#allocation4 + $0x1f0] sm:$0xff] }
 0x27b   :  { %v1806_v35 = vpop.f32.mrf.mxu1 }
 0x27c   :  { %v500_v36 = vadd.f32 %v1806_v35, %v1588_v34  ;;  %v867_v35 = vld [vmem:[#allocation4] sm:$0xff] }
 0x27d   :  { %v494_v37 = vpop.f32.mrf.mxu1 }
 0x27e   :  { %v495_v38 = vadd.f32 %v1588_v34, %v494_v37  ;;  %v534_v41 = vmax.f32 %v500_v36, 0.0  ;;  %v992_v36 = vld [vmem:[#allocation4 + $0x3e8] sm:$0xff]  ;;  %v991_v37 = vld [vmem:[#allocation4 + $0x3e0] sm:$0xff] }
 0x27f   :  { %v1809_v39 = vpop.f32.mrf.mxu1 }
 0x280   :  { %v533_v40 = vmax.f32 %v495_v38, 0.0  ;;  %v510_v42 = vadd.f32 %v1809_v39, %v1588_v34  ;;  %v988_v38 = vld [vmem:[#allocation4 + $0x3c8] sm:$0xff]  ;;  %v987_v39 = vld [vmem:[#allocation4 + $0x3c0] sm:$0xff] }
 0x281   :  { %v504_v43 = vpop.f32.mrf.mxu1 }
 0x282   :  { %v505_v44 = vadd.f32 %v1588_v34, %v504_v43  ;;  %1832 = vmatprep.mubr.msk.f32.mxu1 %vm556_vm3, %v533_v40  ;;  %v536_v48 = vmax.f32 %v510_v42, 0.0  ;;  %v984_v40 = vld [vmem:[#allocation4 + $0x3a8] sm:$0xff]  ;;  %v979_v43 = vld [vmem:[#allocation4 + $0x380] sm:$0xff] }
 0x283   :  { %v1812_v45 = vpop.f32.mrf.mxu1  ;;  %1833 = vmatmul.mubr.msk.f32.vlgmr.msra.gmra.mxu1 %vm556_vm3, %v534_v41  ;;  %v983_v41 = vld [vmem:[#allocation4 + $0x3a0] sm:$0xff]  ;;  %v980_v42 = vld [vmem:[#allocation4 + $0x388] sm:$0xff] }
 0x284   :  { %v535_v46 = vmax.f32 %v505_v44, 0.0  ;;  %v520_v47 = vadd.f32 %v1812_v45, %v1588_v34  ;;  %1018 = vmatpush1.msra.mxu1 %v927_v5  ;;  %v976_v44 = vld [vmem:[#allocation4 + $0x368] sm:$0xff]  ;;  %v975_v45 = vld [vmem:[#allocation4 + $0x360] sm:$0xff] }
 0x285   :  { %v514_v49 = vpop.f32.mrf.mxu1  ;;  %1019 = vmatprep.subr.mxu1 %v924_v6  ;;  %v926_v6 = vld [vmem:[#allocation4 + $0x1d8] sm:$0xff] }
 0x286   :  { %v515_v50 = vadd.f32 %v1588_v34, %v514_v49  ;;  %1835 = vmatprep.mubr.msk.f32.mxu1 %vm556_vm3, %v535_v46  ;;  %v538_v51 = vmax.f32 %v520_v47, 0.0  ;;  %1020 = vmatpush1.msra.mxu1 %v923_v7  ;;  %v972_v46 = vld [vmem:[#allocation4 + $0x348] sm:$0xff]  ;;  %v971_v47 = vld [vmem:[#allocation4 + $0x340] sm:$0xff]  ;;  %v925_v7 = vld [vmem:[#allocation4 + $0x1d0] sm:$0xff] }
 0x287   :  { %1836 = vmatmul.mubr.msk.f32.gmra.mxu1 %vm556_vm3, %v536_v48  ;;  %v1815_v52 = vpop.f32.mrf.mxu1  ;;  %1021 = vmatprep.subr.mxu1 %v920_v8  ;;  %v968_v48 = vld [vmem:[#allocation4 + $0x328] sm:$0xff]  ;;  %v967_v49 = vld [vmem:[#allocation4 + $0x320] sm:$0xff]  ;;  %v922_v8 = vld [vmem:[#allocation4 + $0x1b8] sm:$0xff] }
 0x288   :  { %v537_v53 = vmax.f32 %v515_v50, 0.0  ;;  %v530_v54 = vadd.f32 %v1815_v52, %v1588_v34  ;;  %1022 = vmatpush1.msra.mxu1 %v919_v9  ;;  %v964_v50 = vld [vmem:[#allocation4 + $0x308] sm:$0xff] }
 0x289   :  { %v524_v55 = vpop.f32.mrf.mxu1  ;;  %1023 = vmatprep.subr.mxu1 %v916_v10  ;;  %v960_v52 = vld [vmem:[#allocation4 + $0x2e8] sm:$0xff] }
 0x28a   :  { %v525_v56 = vadd.f32 %v1588_v34, %v524_v55  ;;  %1838 = vmatprep.mubr.msk.f32.mxu1 %vm556_vm3, %v537_v53  ;;  %v540_v57 = vmax.f32 %v530_v54, 0.0  ;;  %1024 = vmatpush1.msra.mxu1 %v915_v11  ;;  %v868_v34 = vld [vmem:[#allocation4 + $0x8] sm:$0xff]  ;;  %v959_v53 = vld [vmem:[#allocation4 + $0x2e0] sm:$0xff]  ;;  %v921_v11 = vld [vmem:[#allocation4 + $0x1b0] sm:$0xff] }
 0x28b   :  { %1839 = vmatmul.mubr.msk.f32.gmra.mxu1 %vm556_vm3, %v538_v51  ;;  %1025 = vmatprep.subr.mxu1 %v912_v12  ;;  %v963_v51 = vld [vmem:[#allocation4 + $0x300] sm:$0xff]  ;;  %v956_v54 = vld [vmem:[#allocation4 + $0x2c8] sm:$0xff] }
 0x28c   :  { %v539_v58 = vmax.f32 %v525_v56, 0.0  ;;  %1026 = vmatpush1.msra.mxu1 %v911_v13  ;;  %v955_v55 = vld [vmem:[#allocation4 + $0x2c0] sm:$0xff]  ;;  %v952_v56 = vld [vmem:[#allocation4 + $0x2a8] sm:$0xff]  ;;  %v918_v13 = vld [vmem:[#allocation4 + $0x198] sm:$0xff] }
 0x28d   :  { %1027 = vmatprep.subr.mxu1 %v908_v14  ;;  %v917_v14 = vld [vmem:[#allocation4 + $0x190] sm:$0xff] }
 0x28e   :  { %1841 = vmatprep.mubr.msk.f32.mxu1 %vm556_vm3, %v539_v58  ;;  %1028 = vmatpush1.msra.mxu1 %v907_v15  ;;  %v948_v58 = vld [vmem:[#allocation4 + $0x288] sm:$0xff]  ;;  %v914_v15 = vld [vmem:[#allocation4 + $0x178] sm:$0xff] }
 0x28f   :  { %1842 = vmatmul.mubr.msk.f32.gmra.mxu1 %vm556_vm3, %v540_v57  ;;  %1029 = vmatprep.subr.mxu1 %v904_v16  ;;  %v951_v57 = vld [vmem:[#allocation4 + $0x2a0] sm:$0xff] }
 0x290   :  { %1030 = vmatpush1.msra.mxu1 %v903_v17 }
 0x291   :  { %1031 = vmatprep.subr.mxu1 %v900_v18  ;;  %v913_v18 = vld [vmem:[#allocation4 + $0x170] sm:$0xff] }
 0x292   :  { %1032 = vmatpush1.msra.mxu1 %v899_v19 }
 0x293   :  { %1033 = vmatprep.subr.mxu1 %v896_v20  ;;  %v910_v20 = vld [vmem:[#allocation4 + $0x158] sm:$0xff] }
 0x294   :  { %1034 = vmatpush1.msra.mxu1 %v895_v21  ;;  %v909_v21 = vld [vmem:[#allocation4 + $0x150] sm:$0xff] }
 0x295   :  { %1035 = vmatprep.subr.mxu1 %v892_v22  ;;  %v906_v22 = vld [vmem:[#allocation4 + $0x138] sm:$0xff] }
 0x296   :  { %1036 = vmatpush1.msra.mxu1 %v891_v23 }
 0x297   :  { %1037 = vmatprep.subr.mxu1 %v888_v24 }
 0x298   :  { %1038 = vmatpush1.msra.mxu1 %v887_v25  ;;  %v905_v25 = vld [vmem:[#allocation4 + $0x130] sm:$0xff] }
 0x299   :  { %1039 = vmatprep.subr.mxu1 %v884_v26 }
 0x29a   :  { %1040 = vmatpush1.msra.mxu1 %v883_v27  ;;  %v902_v27 = vld [vmem:[#allocation4 + $0x118] sm:$0xff] }
 0x29b   :  { %1041 = vmatprep.subr.mxu1 %v880_v28  ;;  %v901_v28 = vld [vmem:[#allocation4 + $0x110] sm:$0xff] }
 0x29c   :  { %1042 = vmatpush1.msra.mxu1 %v879_v29  ;;  %v898_v29 = vld [vmem:[#allocation4 + $0xf8] sm:$0xff] }
 0x29d   :  { %1043 = vmatprep.subr.mxu1 %v876_v30 }
 0x29e   :  { %1044 = vmatpush1.msra.mxu1 %v875_v31 }
 0x29f   :  { %1045 = vmatprep.subr.mxu1 %v872_v32  ;;  %v897_v32 = vld [vmem:[#allocation4 + $0xf0] sm:$0xff] }
 0x2a0   :  { %1046 = vmatpush1.msra.mxu1 %v871_v33 }
 0x2a1   :  { %1047 = vmatprep.subr.mxu1 %v868_v34  ;;  %v894_v34 = vld [vmem:[#allocation4 + $0xd8] sm:$0xff] }
 0x2a2   :  { %1048 = vmatpush1.msra.mxu1 %v867_v35  ;;  %v893_v35 = vld [vmem:[#allocation4 + $0xd0] sm:$0xff] }
 0x2a3   :  { %1049 = vmatprep.subr.mxu1 %v992_v36  ;;  %v890_v36 = vld [vmem:[#allocation4 + $0xb8] sm:$0xff] }
 0x2a4   :  { %1050 = vmatpush2.msra.mxu1 %v991_v37 }
 0x2a5   :  { %1051 = vmatprep.subr.mxu1 %v988_v38 }
 0x2a6   :  { %1052 = vmatpush2.msra.mxu1 %v987_v39  ;;  %v889_v39 = vld [vmem:[#allocation4 + $0xb0] sm:$0xff] }
 0x2a7   :  { %1053 = vmatprep.subr.mxu1 %v984_v40  ;;  %v886_v40 = vld [vmem:[#allocation4 + $0x98] sm:$0xff] }
 0x2a8   :  { %1054 = vmatpush2.msra.mxu1 %v983_v41  ;;  %v885_v41 = vld [vmem:[#allocation4 + $0x90] sm:$0xff] }
 0x2a9   :  { %1055 = vmatprep.subr.mxu1 %v980_v42  ;;  %v882_v42 = vld [vmem:[#allocation4 + $0x78] sm:$0xff] }
 0x2aa   :  { %1056 = vmatpush2.msra.mxu1 %v979_v43 }
 0x2ab   :  { %1057 = vmatprep.subr.mxu1 %v976_v44 }
 0x2ac   :  { %1058 = vmatpush2.msra.mxu1 %v975_v45  ;;  %v881_v45 = vld [vmem:[#allocation4 + $0x70] sm:$0xff] }
 0x2ad   :  { %1059 = vmatprep.subr.mxu1 %v972_v46  ;;  %v878_v46 = vld [vmem:[#allocation4 + $0x58] sm:$0xff] }
 0x2ae   :  { %1060 = vmatpush2.msra.mxu1 %v971_v47  ;;  %v877_v47 = vld [vmem:[#allocation4 + $0x50] sm:$0xff] }
 0x2af   :  { %1061 = vmatprep.subr.mxu1 %v968_v48  ;;  %v874_v48 = vld [vmem:[#allocation4 + $0x38] sm:$0xff] }
 0x2b0   :  { %1062 = vmatpush2.msra.mxu1 %v967_v49 }
 0x2b1   :  { %1063 = vmatprep.subr.mxu1 %v964_v50  ;;  %v873_v50 = vld [vmem:[#allocation4 + $0x30] sm:$0xff] }
 0x2b2   :  { %1064 = vmatpush2.msra.mxu1 %v963_v51  ;;  %v870_v51 = vld [vmem:[#allocation4 + $0x18] sm:$0xff] }
 0x2b3   :  { %1065 = vmatprep.subr.mxu1 %v960_v52  ;;  %v869_v52 = vld [vmem:[#allocation4 + $0x10] sm:$0xff] }
 0x2b4   :  { %1066 = vmatpush2.msra.mxu1 %v959_v53  ;;  %v994_v53 = vld [vmem:[#allocation4 + $0x3f8] sm:$0xff] }
 0x2b5   :  { %1067 = vmatprep.subr.mxu1 %v956_v54  ;;  %v993_v54 = vld [vmem:[#allocation4 + $0x3f0] sm:$0xff] }
 0x2b6   :  { %1068 = vmatpush2.msra.mxu1 %v955_v55  ;;  %v990_v55 = vld [vmem:[#allocation4 + $0x3d8] sm:$0xff] }
 0x2b7   :  { %1069 = vmatprep.subr.mxu1 %v952_v56  ;;  %v989_v56 = vld [vmem:[#allocation4 + $0x3d0] sm:$0xff] }
 0x2b8   :  { %1070 = vmatpush2.msra.mxu1 %v951_v57  ;;  %v985_v57 = vld [vmem:[#allocation4 + $0x3b0] sm:$0xff] }
 0x2b9   :  { %1071 = vmatprep.subr.mxu1 %v948_v58  ;;  %v982_v58 = vld [vmem:[#allocation4 + $0x398] sm:$0xff] }
 0x2ba   :  { %1072 = vmatpush2.msra.mxu1 %v947_v59  ;;  %v981_v59 = vld [vmem:[#allocation4 + $0x390] sm:$0xff] }
 0x343   :  { %v1834_v60 = vpop.f32.mrf.mxu1 }
 0x344   :  { %v653_v1 = vadd.f32 %v1834_v60, %v2131_v61  ;;  %v978_v60 = vld [vmem:[#allocation4 + $0x378] sm:$0xff] }
 0x345   :  { %v647_v62 = vpop.f32.mrf.mxu1 }
 0x346   :  { %v648_v63 = vadd.f32 %v2131_v61, %v647_v62  ;;  %v687_v9 = vmax.f32 %v653_v1, 0.0  ;;  %v974_v62 = vld [vmem:[#allocation4 + $0x358] sm:$0xff]  ;;  %v969_v1 = vld [vmem:[#allocation4 + $0x330] sm:$0xff] }
 0x347   :  { %v1837_v0 = vpop.f32.mrf.mxu1 }
 0x348   :  { %v686_v3 = vmax.f32 %v648_v63, 0.0  ;;  %v663_v16 = vadd.f32 %v1837_v0, %v2131_v61  ;;  %v973_v63 = vld [vmem:[#allocation4 + $0x350] sm:$0xff]  ;;  %v970_v0 = vld [vmem:[#allocation4 + $0x338] sm:$0xff] }
 0x349   :  { %v657_v5 = vpop.f32.mrf.mxu1 }
 0x34a   :  { %803 = vmatmul.mubr.f32.vlgmr.msra.gmra.mxu0 %v686_v3  ;;  %v658_v10 = vadd.f32 %v2131_v61, %v657_v5  ;;  %v689_v23 = vmax.f32 %v663_v16, 0.0  ;;  %v966_v3 = vld [vmem:[#allocation4 + $0x318] sm:$0xff]  ;;  %v945_v16 = vld [vmem:[#allocation4 + $0x270] sm:$0xff] }
 0x34b   :  { %808 = vmatprep.mubr.f32.mxu0 %v1927_v2  ;;  %1131 = vmatpush1.msra.mxu0 %v929_v4  ;;  %v1840_v12 = vpop.f32.mrf.mxu1  ;;  %v965_v4 = vld [vmem:[#allocation4 + $0x310] sm:$0xff]  ;;  %v962_v5 = vld [vmem:[#allocation4 + $0x2f8] sm:$0xff] }
 0x34c   :  { %1132 = vmatprep.subr.mxu0 %v926_v6  ;;  %v688_v17 = vmax.f32 %v658_v10, 0.0  ;;  %v673_v30 = vadd.f32 %v1840_v12, %v2131_v61  ;;  %v961_v6 = vld [vmem:[#allocation4 + $0x2f0] sm:$0xff] }
 0x34d   :  { %1133 = vmatpush1.msra.mxu0 %v925_v7  ;;  %v667_v19 = vpop.f32.mrf.mxu1  ;;  %v958_v7 = vld [vmem:[#allocation4 + $0x2d8] sm:$0xff]  ;;  %v953_v10 = vld [vmem:[#allocation4 + $0x2b0] sm:$0xff] }
 0x34e   :  { %809 = vmatmul.mubr.f32.gmra.mxu0 %v687_v9  ;;  %1134 = vmatprep.subr.mxu0 %v922_v8  ;;  %v668_v24 = vadd.f32 %v2131_v61, %v667_v19  ;;  %v691_v37 = vmax.f32 %v673_v30, 0.0  ;;  %v957_v8 = vld [vmem:[#allocation4 + $0x2d0] sm:$0xff]  ;;  %v954_v9 = vld [vmem:[#allocation4 + $0x2b8] sm:$0xff]  ;;  %v939_v19 = vld [vmem:[#allocation4 + $0x240] sm:$0xff] }
 0x34f   :  { %814 = vmatprep.mubr.f32.mxu0 %v1927_v2  ;;  %1135 = vmatpush1.msra.mxu0 %v921_v11  ;;  %v1843_v26 = vpop.f32.mrf.mxu1  ;;  %v950_v11 = vld [vmem:[#allocation4 + $0x298] sm:$0xff]  ;;  %v949_v12 = vld [vmem:[#allocation4 + $0x290] sm:$0xff] }
 0x350   :  { %1136 = vmatprep.subr.mxu0 %v918_v13  ;;  %v690_v31 = vmax.f32 %v668_v24, 0.0  ;;  %v683_v43 = vadd.f32 %v1843_v26, %v2131_v61  ;;  %v944_v13 = vld [vmem:[#allocation4 + $0x268] sm:$0xff]  ;;  %v937_v24 = vld [vmem:[#allocation4 + $0x230] sm:$0xff]  ;;  %v934_v26 = vld [vmem:[#allocation4 + $0x218] sm:$0xff] }
 0x351   :  { %1137 = vmatpush1.msra.mxu0 %v917_v14  ;;  %v677_v33 = vpop.f32.mrf.mxu1  ;;  %v946_v14 = vld [vmem:[#allocation4 + $0x278] sm:$0xff]  ;;  %1073 = vmatprep.subr.mxu1 %v944_v13  ;;  %v1287_v13 = vld [vmem:[#allocation6 + $0x60] sm:$0xff] }
 0x352   :  { %815 = vmatmul.mubr.f32.gmra.mxu0 %v688_v17  ;;  %1138 = vmatprep.subr.mxu0 %v914_v15  ;;  %v678_v38 = vadd.f32 %v2131_v61, %v677_v33  ;;  %v693_v49 = vmax.f32 %v683_v43, 0.0  ;;  %v977_v61 = vld [vmem:[#allocation4 + $0x370] sm:$0xff]  ;;  %v943_v15 = vld [vmem:[#allocation4 + $0x260] sm:$0xff]  ;;  %v940_v17 = vld [vmem:[#allocation4 + $0x248] sm:$0xff] }
 0x353   :  { %820 = vmatprep.mubr.f32.mxu0 %v1927_v2  ;;  %1139 = vmatpush1.msra.mxu0 %v913_v18  ;;  %v942_v18 = vld [vmem:[#allocation4 + $0x258] sm:$0xff] }
 0x354   :  { %1140 = vmatprep.subr.mxu0 %v910_v20  ;;  %v692_v44 = vmax.f32 %v678_v38, 0.0  ;;  %1074 = vmatpush2.msra.mxu1 %v943_v15  ;;  %v941_v20 = vld [vmem:[#allocation4 + $0x250] sm:$0xff]  ;;  %v1338_v30 = vld [vmem:[#allocation6 + $0x1f8] sm:$0xff] }
 0x355   :  { %1141 = vmatpush1.msra.mxu0 %v909_v21  ;;  %1075 = vmatprep.subr.mxu1 %v940_v17  ;;  %v936_v21 = vld [vmem:[#allocation4 + $0x228] sm:$0xff]  ;;  %v1334_v17 = vld [vmem:[#allocation6 + $0x1d8] sm:$0xff] }
 0x356   :  { %821 = vmatmul.mubr.f32.gmra.mxu0 %v689_v23  ;;  %1142 = vmatprep.subr.mxu0 %v906_v22  ;;  %v938_v22 = vld [vmem:[#allocation4 + $0x238] sm:$0xff]  ;;  %v935_v23 = vld [vmem:[#allocation4 + $0x220] sm:$0xff] }
 0x357   :  { %826 = vmatprep.mubr.f32.mxu0 %v1927_v2  ;;  %1143 = vmatpush1.msra.mxu0 %v905_v25  ;;  %v932_v25 = vld [vmem:[#allocation4 + $0x208] sm:$0xff] }
 0x358   :  { %1144 = vmatprep.subr.mxu0 %v902_v27  ;;  %1076 = vmatpush2.msra.mxu1 %v939_v19  ;;  %v931_v27 = vld [vmem:[#allocation4 + $0x200] sm:$0xff] }
 0x359   :  { %1145 = vmatpush1.msra.mxu0 %v901_v28  ;;  %1077 = vmatprep.subr.mxu1 %v936_v21  ;;  %v933_v28 = vld [vmem:[#allocation4 + $0x210] sm:$0xff] }
 0x35a   :  { %827 = vmatmul.mubr.f32.gmra.mxu0 %v690_v31  ;;  %1146 = vmatprep.subr.mxu0 %v898_v29  ;;  %v1306_v29 = vld [vmem:[#allocation6 + $0xf8] sm:$0xff]  ;;  %v728_v31 = vlaneseq }
 0x35b   :  { %832 = vmatprep.mubr.f32.mxu0 %v1927_v2  ;;  %1147 = vmatpush1.msra.mxu0 %v897_v32 }
 0x35c   :  { %1148 = vmatprep.subr.mxu0 %v894_v34  ;;  %1078 = vmatpush2.msra.mxu1 %v935_v23  ;;  %v2148_v32 = vshrl.u32 %v728_v31, 7  ;;  %v726_v34 = vld [vmem:[%s2275_s10] sm:$0x3]  ;;  %v1286_v23 = vld [vmem:[#allocation6 + $0x58] sm:$0xff] }
 0x35d   :  { %1149 = vmatpush1.msra.mxu0 %v893_v35  ;;  %1079 = vmatprep.subr.mxu1 %v932_v25 }
 0x35e   :  { %833 = vmatmul.mubr.f32.gmra.mxu0 %v691_v37  ;;  %1150 = vmatprep.subr.mxu0 %v890_v36  ;;  %v730_v33 = vsub.s32 0, %v2148_v32  ;;  %v734_v35 = vsub.s32 1, %v2148_v32 }
 0x35f   :  { %838 = vmatprep.mubr.f32.mxu0 %v1927_v2  ;;  %1151 = vmatpush1.msra.mxu0 %v889_v39 }
 0x360   :  { %1152 = vmatprep.subr.mxu0 %v886_v40  ;;  %1080 = vmatpush2.msra.mxu1 %v931_v27  ;;  %v2157_v36 = vrot.slane %v726_v34, %v730_v33  ;;  %v2161_v37 = vrot.slane %v726_v34, %v734_v35  ;;  %v1333_v27 = vld [vmem:[#allocation6 + $0x1d0] sm:$0xff] }
 0x361   :  { %1153 = vmatpush1.msra.mxu0 %v885_v41  ;;  %1654 = vmatprep.subr.mxu1 %v1306_v29 }
 0x362   :  { %839 = vmatmul.mubr.f32.gmra.mxu0 %v692_v44  ;;  %1154 = vmatprep.subr.mxu0 %v882_v42 }
 0x363   :  { %844 = vmatprep.mubr.f32.mxu0 %v1927_v2  ;;  %1155 = vmatpush1.msra.mxu0 %v881_v45  ;;  %v986_v2 = vld [vmem:[#allocation4 + $0x3b8] sm:$0xff] }
 0x364   :  { %1156 = vmatprep.subr.mxu0 %v878_v46 }
 0x365   :  { %1157 = vmatpush1.msra.mxu0 %v877_v47  ;;  %v1290_v47 = vld [vmem:[#allocation6 + $0x78] sm:$0xff] }
 0x366   :  { %845 = vmatmul.mubr.f32.gmra.mxu0 %v693_v49  ;;  %1158 = vmatprep.subr.mxu0 %v874_v48  ;;  %v1322_v48 = vld [vmem:[#allocation6 + $0x178] sm:$0xff] }
 0x367   :  { %1159 = vmatpush1.msra.mxu0 %v873_v50  ;;  %v1305_v50 = vld [vmem:[#allocation6 + $0xf0] sm:$0xff] }
 0x368   :  { %1160 = vmatprep.subr.mxu0 %v870_v51  ;;  %v1337_v51 = vld [vmem:[#allocation6 + $0x1f0] sm:$0xff] }
 0x369   :  { %1161 = vmatpush1.msra.mxu0 %v869_v52 }
 0x36a   :  { %1162 = vmatprep.subr.mxu0 %v994_v53 }
 0x36b   :  { %1163 = vmatpush2.msra.mxu0 %v993_v54 }
 0x36c   :  { %1164 = vmatprep.subr.mxu0 %v990_v55 }
 0x36d   :  { %1165 = vmatpush2.msra.mxu0 %v989_v56 }
 0x36e   :  { %1166 = vmatprep.subr.mxu0 %v986_v2  ;;  %v1289_v2 = vld [vmem:[#allocation6 + $0x70] sm:$0xff] }
 0x36f   :  { %1167 = vmatpush2.msra.mxu0 %v985_v57  ;;  %v1321_v57 = vld [vmem:[#allocation6 + $0x170] sm:$0xff] }
 0x370   :  { %1168 = vmatprep.subr.mxu0 %v982_v58 }
 0x371   :  { %1169 = vmatpush2.msra.mxu0 %v981_v59  ;;  %v1304_v59 = vld [vmem:[#allocation6 + $0xe8] sm:$0xff] }
 0x372   :  { %1170 = vmatprep.subr.mxu0 %v978_v60  ;;  %v1336_v60 = vld [vmem:[#allocation6 + $0x1e8] sm:$0xff] }
 0x373   :  { %1171 = vmatpush2.msra.mxu0 %v977_v61 }
 0x374   :  { %1172 = vmatprep.subr.mxu0 %v974_v62 }
 0x375   :  { %1173 = vmatpush2.msra.mxu0 %v973_v63 }
 0x376   :  { %1174 = vmatprep.subr.mxu0 %v970_v0 }
 0x377   :  { %1175 = vmatpush2.msra.mxu0 %v969_v1 }
 0x378   :  { %1176 = vmatprep.subr.mxu0 %v966_v3  ;;  %v1288_v3 = vld [vmem:[#allocation6 + $0x68] sm:$0xff] }
 0x379   :  { %1177 = vmatpush2.msra.mxu0 %v965_v4  ;;  %v1320_v4 = vld [vmem:[#allocation6 + $0x168] sm:$0xff] }
 0x37a   :  { %1178 = vmatprep.subr.mxu0 %v962_v5 }
 0x37b   :  { %1179 = vmatpush2.msra.mxu0 %v961_v6  ;;  %v1303_v6 = vld [vmem:[#allocation6 + $0xe0] sm:$0xff] }
 0x37c   :  { %1180 = vmatprep.subr.mxu0 %v958_v7  ;;  %v1335_v7 = vld [vmem:[#allocation6 + $0x1e0] sm:$0xff] }
 0x37d   :  { %1181 = vmatpush2.msra.mxu0 %v957_v8 }
 0x37e   :  { %1182 = vmatprep.subr.mxu0 %v954_v9 }
 0x37f   :  { %1183 = vmatpush2.msra.mxu0 %v953_v10 }
 0x380   :  { %1184 = vmatprep.subr.mxu0 %v950_v11 }
 0x381   :  { %1185 = vmatpush2.msra.mxu0 %v949_v12 }
 0x382   :  { %1186 = vmatprep.subr.mxu0 %v946_v14  ;;  %v1319_v14 = vld [vmem:[#allocation6 + $0x160] sm:$0xff] }
 0x383   :  { %1187 = vmatpush2.msra.mxu0 %v945_v16  ;;  %v1302_v16 = vld [vmem:[#allocation6 + $0xd8] sm:$0xff] }
 0x384   :  { %1188 = vmatprep.subr.mxu0 %v942_v18 }
 0x385   :  { %1189 = vmatpush2.msra.mxu0 %v941_v20 }
 0x386   :  { %1190 = vmatprep.subr.mxu0 %v938_v22 }
 0x387   :  { %1191 = vmatpush2.msra.mxu0 %v937_v24  ;;  %v1318_v24 = vld [vmem:[#allocation6 + $0x158] sm:$0xff] }
 0x388   :  { %1192 = vmatprep.subr.mxu0 %v934_v26  ;;  %v1301_v26 = vld [vmem:[#allocation6 + $0xd0] sm:$0xff] }
 0x389   :  { %1193 = vmatpush2.msra.mxu0 %v933_v28 }
 0x38a   :  { %1710 = vmatprep.subr.mxu0 %v1338_v30 }
 0x40a   :  { %v804_v38 = vpop.f32.mrf.mxu0 }
 0x40b   :  { %v805_v39 = vadd.f32 %v804_v38, %v2157_v36  ;;  %v1285_v38 = vld [vmem:[#allocation6 + $0x50] sm:$0xff] }
 0x40c   :  { %v806_v40 = vpop.f32.mrf.mxu0 }
 0x40d   :  { %v807_v41 = vadd.f32 %v806_v40, %v2161_v37  ;;  %v851_v44 = vmax.f32 %v805_v39, 0.0  ;;  %v1317_v39 = vld [vmem:[#allocation6 + $0x150] sm:$0xff] }
 0x40e   :  { %v810_v42 = vpop.f32.mrf.mxu0 }
 0x40f   :  { %v852_v43 = vmax.f32 %v807_v41, 0.0  ;;  %v811_v45 = vadd.f32 %v810_v42, %v2157_v36  ;;  %v1300_v41 = vld [vmem:[#allocation6 + $0xc8] sm:$0xff] }
 0x410   :  { %v812_v46 = vpop.f32.mrf.mxu0  ;;  %v1332_v42 = vld [vmem:[#allocation6 + $0x1c8] sm:$0xff] }
 0x411   :  { %v813_v49 = vadd.f32 %v812_v46, %v2161_v37  ;;  %1081 = vmatprep.mubr.f32.mxu1 %v852_v43  ;;  %1194 = vmatprep.mubr.f32.mxu0 %v852_v43  ;;  %v853_v54 = vmax.f32 %v811_v45, 0.0 }
 0x412   :  { %v816_v52 = vpop.f32.mrf.mxu0  ;;  %1082 = vmatmul.mubr.f32.vlgmr.msra.gmra.mxu1 %v851_v44  ;;  %1195 = vmatmul.mubr.f32.vlgmr.msra.gmra.mxu0 %v851_v44 }
 0x413   :  { %v854_v53 = vmax.f32 %v813_v49, 0.0  ;;  %1655 = vmatpush3.msra.mxu1 %v1290_v47  ;;  %1711 = vmatpush3.msra.mxu0 %v1322_v48  ;;  %v817_v55 = vadd.f32 %v816_v52, %v2157_v36  ;;  %v1284_v48 = vld [vmem:[#allocation6 + $0x48] sm:$0xff]  ;;  %v1331_v52 = vld [vmem:[#allocation6 + $0x1c0] sm:$0xff] }
 0x414   :  { %v818_v56 = vpop.f32.mrf.mxu0  ;;  %1656 = vmatprep.subr.mxu1 %v1305_v50  ;;  %1712 = vmatprep.subr.mxu0 %v1337_v51  ;;  %v1316_v49 = vld [vmem:[#allocation6 + $0x148] sm:$0xff]  ;;  %v1299_v51 = vld [vmem:[#allocation6 + $0xc0] sm:$0xff] }
 0x415   :  { %v819_v58 = vadd.f32 %v818_v56, %v2161_v37  ;;  %1087 = vmatprep.mubr.f32.mxu1 %v854_v53  ;;  %1200 = vmatprep.mubr.f32.mxu0 %v854_v53  ;;  %v855_v63 = vmax.f32 %v817_v55, 0.0  ;;  %v1283_v55 = vld [vmem:[#allocation6 + $0x40] sm:$0xff]  ;;  %v1298_v56 = vld [vmem:[#allocation6 + $0xb8] sm:$0xff] }
 0x416   :  { %v822_v61 = vpop.f32.mrf.mxu0  ;;  %1088 = vmatmul.mubr.f32.gmra.mxu1 %v853_v54  ;;  %1201 = vmatmul.mubr.f32.gmra.mxu0 %v853_v54 }
 0x417   :  { %v856_v62 = vmax.f32 %v819_v58, 0.0  ;;  %1657 = vmatpush3.msra.mxu1 %v1289_v2  ;;  %1713 = vmatpush3.msra.mxu0 %v1321_v57  ;;  %v823_v0 = vadd.f32 %v822_v61, %v2157_v36  ;;  %v1330_v2 = vld [vmem:[#allocation6 + $0x1b8] sm:$0xff]  ;;  %v1297_v58 = vld [vmem:[#allocation6 + $0xb0] sm:$0xff] }
 0x418   :  { %v824_v1 = vpop.f32.mrf.mxu0  ;;  %1658 = vmatprep.subr.mxu1 %v1304_v59  ;;  %1714 = vmatprep.subr.mxu0 %v1336_v60  ;;  %v1314_v57 = vld [vmem:[#allocation6 + $0x138] sm:$0xff]  ;;  %v1329_v59 = vld [vmem:[#allocation6 + $0x1b0] sm:$0xff] }
 0x419   :  { %v825_v5 = vadd.f32 %v824_v1, %v2161_v37  ;;  %1093 = vmatprep.mubr.f32.mxu1 %v856_v62  ;;  %1206 = vmatprep.mubr.f32.mxu0 %v856_v62  ;;  %v857_v10 = vmax.f32 %v823_v0, 0.0  ;;  %v1281_v60 = vld [vmem:[#allocation6 + $0x30] sm:$0xff]  ;;  %v1296_v62 = vld [vmem:[#allocation6 + $0xa8] sm:$0xff] }
 0x41a   :  { %v828_v8 = vpop.f32.mrf.mxu0  ;;  %1094 = vmatmul.mubr.f32.gmra.mxu1 %v855_v63  ;;  %1207 = vmatmul.mubr.f32.gmra.mxu0 %v855_v63  ;;  %v1313_v61 = vld [vmem:[#allocation6 + $0x130] sm:$0xff]  ;;  %v1328_v63 = vld [vmem:[#allocation6 + $0x1a8] sm:$0xff] }
 0x41b   :  { %v858_v9 = vmax.f32 %v825_v5, 0.0  ;;  %1659 = vmatpush3.msra.mxu1 %v1288_v3  ;;  %1715 = vmatpush3.msra.mxu0 %v1320_v4  ;;  %v829_v11 = vadd.f32 %v828_v8, %v2157_v36  ;;  %v1280_v0 = vld [vmem:[#allocation6 + $0x28] sm:$0xff]  ;;  %v1295_v3 = vld [vmem:[#allocation6 + $0xa0] sm:$0xff]  ;;  %v1326_v8 = vld [vmem:[#allocation6 + $0x198] sm:$0xff] }
 0x41c   :  { %v830_v12 = vpop.f32.mrf.mxu0  ;;  %1660 = vmatprep.subr.mxu1 %v1303_v6  ;;  %1716 = vmatprep.subr.mxu0 %v1335_v7  ;;  %v1312_v1 = vld [vmem:[#allocation6 + $0x128] sm:$0xff]  ;;  %v1327_v4 = vld [vmem:[#allocation6 + $0x1a0] sm:$0xff]  ;;  %v1294_v7 = vld [vmem:[#allocation6 + $0x98] sm:$0xff] }
 0x41d   :  { %v831_v15 = vadd.f32 %v830_v12, %v2161_v37  ;;  %1099 = vmatprep.mubr.f32.mxu1 %v858_v9  ;;  %1212 = vmatprep.mubr.f32.mxu0 %v858_v9  ;;  %v859_v20 = vmax.f32 %v829_v11, 0.0  ;;  %v1279_v5 = vld [vmem:[#allocation6 + $0x20] sm:$0xff]  ;;  %v1278_v9 = vld [vmem:[#allocation6 + $0x18] sm:$0xff]  ;;  %v1293_v11 = vld [vmem:[#allocation6 + $0x90] sm:$0xff] }
 0x41e   :  { %v834_v18 = vpop.f32.mrf.mxu0  ;;  %1100 = vmatmul.mubr.f32.gmra.mxu1 %v857_v10  ;;  %1213 = vmatmul.mubr.f32.gmra.mxu0 %v857_v10  ;;  %v1311_v6 = vld [vmem:[#allocation6 + $0x120] sm:$0xff]  ;;  %v1310_v10 = vld [vmem:[#allocation6 + $0x118] sm:$0xff]  ;;  %v1325_v12 = vld [vmem:[#allocation6 + $0x190] sm:$0xff] }
 0x41f   :  { %v860_v19 = vmax.f32 %v831_v15, 0.0  ;;  %1661 = vmatpush3.msra.mxu1 %v1287_v13  ;;  %1717 = vmatpush3.msra.mxu0 %v1319_v14  ;;  %v835_v21 = vadd.f32 %v834_v18, %v2157_v36  ;;  %v1277_v13 = vld [vmem:[#allocation6 + $0x10] sm:$0xff]  ;;  %v1292_v15 = vld [vmem:[#allocation6 + $0x88] sm:$0xff] }
 0x420   :  { %v836_v22 = vpop.f32.mrf.mxu0  ;;  %1662 = vmatprep.subr.mxu1 %v1302_v16  ;;  %1718 = vmatprep.subr.mxu0 %v1334_v17  ;;  %v1309_v14 = vld [vmem:[#allocation6 + $0x110] sm:$0xff]  ;;  %v1324_v16 = vld [vmem:[#allocation6 + $0x188] sm:$0xff] }
 0x421   :  { %v837_v25 = vadd.f32 %v836_v22, %v2161_v37  ;;  %1105 = vmatprep.mubr.f32.mxu1 %v860_v19  ;;  %1218 = vmatprep.mubr.f32.mxu0 %v860_v19  ;;  %v861_v30 = vmax.f32 %v835_v21, 0.0  ;;  %v1276_v17 = vld [vmem:[#allocation6 + $0x8] sm:$0xff]  ;;  %v1291_v19 = vld [vmem:[#allocation6 + $0x80] sm:$0xff] }
 0x422   :  { %v840_v28 = vpop.f32.mrf.mxu0  ;;  %1106 = vmatmul.mubr.f32.gmra.mxu1 %v859_v20  ;;  %1219 = vmatmul.mubr.f32.gmra.mxu0 %v859_v20  ;;  %v1308_v18 = vld [vmem:[#allocation6 + $0x108] sm:$0xff]  ;;  %v1323_v20 = vld [vmem:[#allocation6 + $0x180] sm:$0xff] }
 0x423   :  { %v862_v29 = vmax.f32 %v837_v25, 0.0  ;;  %1663 = vmatpush3.msra.mxu1 %v1286_v23  ;;  %1719 = vmatpush3.msra.mxu0 %v1318_v24  ;;  %v841_v31 = vadd.f32 %v840_v28, %v2157_v36  ;;  %v1275_v21 = vld [vmem:[#allocation6] sm:$0xff]  ;;  %v1007_v23 = vsub.s32 2, %v2148_v32  ;;  %v1011_v25 = vsub.s32 3, %v2148_v32 }
 0x424   :  { %v842_v34 = vpop.f32.mrf.mxu0  ;;  %1664 = vmatprep.subr.mxu1 %v1301_v26  ;;  %1720 = vmatprep.subr.mxu0 %v1333_v27  ;;  %v1307_v22 = vld [vmem:[#allocation6 + $0x100] sm:$0xff] }
 0x425   :  { %v843_v40 = vadd.f32 %v842_v34, %v2161_v37  ;;  %1111 = vmatprep.mubr.f32.mxu1 %v862_v29  ;;  %1224 = vmatprep.mubr.f32.mxu0 %v862_v29  ;;  %v863_v45 = vmax.f32 %v841_v31, 0.0  ;;  %v995_v24 = vld [vmem:[%s2277_s12] sm:$0xf] }
 0x426   :  { %v846_v43 = vpop.f32.mrf.mxu0  ;;  %1112 = vmatmul.mubr.f32.gmra.mxu1 %v861_v30  ;;  %1225 = vmatmul.mubr.f32.gmra.mxu0 %v861_v30  ;;  %v2186_v26 = vrot.slane %v995_v24, %v730_v33  ;;  %v2188_v27 = vrot.slane %v995_v24, %v1007_v23  ;;  %v2192_v28 = vrot.slane %v995_v24, %v734_v35 }
 0x427   :  { %v864_v44 = vmax.f32 %v843_v40, 0.0  ;;  %1665 = vmatpush3.msra.mxu1 %v1285_v38  ;;  %1721 = vmatpush3.msra.mxu0 %v1317_v39  ;;  %v847_v46 = vadd.f32 %v846_v43, %v2157_v36  ;;  %v1315_v36 = vld [vmem:[#allocation6 + $0x140] sm:$0xff]  ;;  %v2194_v29 = vrot.slane %v995_v24, %v1011_v25 }
 0x428   :  { %v848_v47 = vpop.f32.mrf.mxu0  ;;  %1666 = vmatprep.subr.mxu1 %v1300_v41  ;;  %1722 = vmatprep.subr.mxu0 %v1332_v42 }
 0x429   :  { %v849_v50 = vadd.f32 %v848_v47, %v2161_v37  ;;  %1117 = vmatprep.mubr.f32.mxu1 %v864_v44  ;;  %1230 = vmatprep.mubr.f32.mxu0 %v864_v44  ;;  %v865_v54 = vmax.f32 %v847_v46, 0.0  ;;  %v1282_v37 = vld [vmem:[#allocation6 + $0x38] sm:$0xff] }
 0x42a   :  { %1118 = vmatmul.mubr.f32.gmra.mxu1 %v863_v45  ;;  %1231 = vmatmul.mubr.f32.gmra.mxu0 %v863_v45 }
 0x42b   :  { %v866_v53 = vmax.f32 %v849_v50, 0.0  ;;  %1667 = vmatpush3.msra.mxu1 %v1284_v48  ;;  %1723 = vmatpush3.msra.mxu0 %v1316_v49 }
 0x42c   :  { %1668 = vmatprep.subr.mxu1 %v1299_v51  ;;  %1724 = vmatprep.subr.mxu0 %v1331_v52 }
 0x42d   :  { %1123 = vmatprep.mubr.f32.mxu1 %v866_v53  ;;  %1236 = vmatprep.mubr.f32.mxu0 %v866_v53 }
 0x42e   :  { %1124 = vmatmul.mubr.f32.gmra.mxu1 %v865_v54  ;;  %1237 = vmatmul.mubr.f32.gmra.mxu0 %v865_v54 }
 0x42f   :  { %1669 = vmatpush3.msra.mxu1 %v1283_v55  ;;  %1725 = vmatpush3.msra.mxu0 %v1315_v36 }
 0x430   :  { %1670 = vmatprep.subr.mxu1 %v1298_v56  ;;  %1726 = vmatprep.subr.mxu0 %v1330_v2 }
 0x431   :  { %1671 = vmatpush3.msra.mxu1 %v1282_v37  ;;  %1727 = vmatpush3.msra.mxu0 %v1314_v57 }
 0x432   :  { %1672 = vmatprep.subr.mxu1 %v1297_v58  ;;  %1728 = vmatprep.subr.mxu0 %v1329_v59 }
 0x433   :  { %1673 = vmatpush3.msra.mxu1 %v1281_v60  ;;  %1729 = vmatpush3.msra.mxu0 %v1313_v61 }
 0x434   :  { %1674 = vmatprep.subr.mxu1 %v1296_v62  ;;  %1730 = vmatprep.subr.mxu0 %v1328_v63 }
 0x435   :  { %1675 = vmatpush3.msra.mxu1 %v1280_v0  ;;  %1731 = vmatpush3.msra.mxu0 %v1312_v1 }
 0x436   :  { %1676 = vmatprep.subr.mxu1 %v1295_v3  ;;  %1732 = vmatprep.subr.mxu0 %v1327_v4 }
 0x437   :  { %1677 = vmatpush3.msra.mxu1 %v1279_v5  ;;  %1733 = vmatpush3.msra.mxu0 %v1311_v6 }
 0x438   :  { %1678 = vmatprep.subr.mxu1 %v1294_v7  ;;  %1734 = vmatprep.subr.mxu0 %v1326_v8 }
 0x439   :  { %1679 = vmatpush3.msra.mxu1 %v1278_v9  ;;  %1735 = vmatpush3.msra.mxu0 %v1310_v10 }
 0x43a   :  { %1680 = vmatprep.subr.mxu1 %v1293_v11  ;;  %1736 = vmatprep.subr.mxu0 %v1325_v12 }
 0x43b   :  { %1681 = vmatpush3.msra.mxu1 %v1277_v13  ;;  %1737 = vmatpush3.msra.mxu0 %v1309_v14 }
 0x43c   :  { %1682 = vmatprep.subr.mxu1 %v1292_v15  ;;  %1738 = vmatprep.subr.mxu0 %v1324_v16 }
 0x43d   :  { %1683 = vmatpush3.msra.mxu1 %v1276_v17  ;;  %1739 = vmatpush3.msra.mxu0 %v1308_v18 }
 0x43e   :  { %1684 = vmatprep.subr.mxu1 %v1291_v19  ;;  %1740 = vmatprep.subr.mxu0 %v1323_v20 }
 0x43f   :  { %1685 = vmatpush3.msra.mxu1 %v1275_v21  ;;  %1741 = vmatpush3.msra.mxu0 %v1307_v22 }
 0x4d2   :  { %v1083_v30 = vpop.f32.mrf.mxu1  ;;  %v1196_v31 = vpop.f32.mrf.mxu0 }
 0x4d3   :  { %v1084_v34 = vadd.f32 %v1083_v30, %v2186_v26  ;;  %v1197_v38 = vadd.f32 %v1196_v31, %v2188_v27 }
 0x4d4   :  { %v1085_v39 = vpop.f32.mrf.mxu1  ;;  %v1198_v40 = vpop.f32.mrf.mxu0 }
 0x4d5   :  { %v1086_v41 = vadd.f32 %v1085_v39, %v2192_v28  ;;  %v1199_v33 = vadd.f32 %v1198_v40, %v2194_v29  ;;  %v1243_v35 = vmax.f32 %v1084_v34, 0.0  ;;  %v1245_v45 = vmax.f32 %v1197_v38, 0.0 }
 0x4d6   :  { %v1089_v42 = vpop.f32.mrf.mxu1  ;;  %v1202_v43 = vpop.f32.mrf.mxu0 }
 0x4d7   :  { %v1244_v44 = vmax.f32 %v1086_v41, 0.0  ;;  %v1246_v32 = vmax.f32 %v1199_v33, 0.0  ;;  %v1090_v46 = vadd.f32 %v1089_v42, %v2186_v26  ;;  %v1203_v47 = vadd.f32 %v1202_v43, %v2188_v27 }
 0x4d8   :  { %v1091_v48 = vpop.f32.mrf.mxu1  ;;  %v1204_v49 = vpop.f32.mrf.mxu0 }
 0x4d9   :  { %v1092_v50 = vadd.f32 %v1091_v48, %v2192_v28  ;;  %v1205_v51 = vadd.f32 %v1204_v49, %v2194_v29  ;;  %1410 = vmatprep.mubr.f32.mxu1 %v1244_v44  ;;  %1515 = vmatprep.mubr.f32.mxu0 %v1246_v32  ;;  %v1247_v36 = vmax.f32 %v1090_v46, 0.0  ;;  %v1249_v56 = vmax.f32 %v1203_v47, 0.0 }
 0x4da   :  { %v1095_v52 = vpop.f32.mrf.mxu1  ;;  %v1208_v53 = vpop.f32.mrf.mxu0  ;;  %1411 = vmatmul.mubr.f32.vlgmr.msra.gmra.mxu1 %v1243_v35  ;;  %1516 = vmatmul.mubr.f32.vlgmr.msra.gmra.mxu0 %v1245_v45 }
 0x4db   :  { %v1248_v54 = vmax.f32 %v1092_v50, 0.0  ;;  %v1250_v55 = vmax.f32 %v1205_v51, 0.0  ;;  %v1096_v2 = vadd.f32 %v1095_v52, %v2186_v26  ;;  %v1209_v37 = vadd.f32 %v1208_v53, %v2188_v27 }
 0x4dc   :  { %v1097_v57 = vpop.f32.mrf.mxu1  ;;  %v1210_v58 = vpop.f32.mrf.mxu0 }
 0x4dd   :  { %v1098_v59 = vadd.f32 %v1097_v57, %v2192_v28  ;;  %v1211_v60 = vadd.f32 %v1210_v58, %v2194_v29  ;;  %1415 = vmatprep.mubr.f32.mxu1 %v1248_v54  ;;  %1520 = vmatprep.mubr.f32.mxu0 %v1250_v55  ;;  %v1251_v1 = vmax.f32 %v1096_v2, 0.0  ;;  %v1253_v3 = vmax.f32 %v1209_v37, 0.0 }
 0x4de   :  { %v1101_v61 = vpop.f32.mrf.mxu1  ;;  %v1214_v62 = vpop.f32.mrf.mxu0  ;;  %1416 = vmatmul.mubr.f32.gmra.mxu1 %v1247_v36  ;;  %1521 = vmatmul.mubr.f32.gmra.mxu0 %v1249_v56 }
 0x4df   :  { %v1252_v63 = vmax.f32 %v1098_v59, 0.0  ;;  %v1254_v0 = vmax.f32 %v1211_v60, 0.0  ;;  %v1102_v4 = vadd.f32 %v1101_v61, %v2186_v26  ;;  %v1215_v5 = vadd.f32 %v1214_v62, %v2188_v27 }
 0x4e0   :  { %v1103_v6 = vpop.f32.mrf.mxu1  ;;  %v1216_v7 = vpop.f32.mrf.mxu0 }
 0x4e1   :  { %v1104_v8 = vadd.f32 %v1103_v6, %v2192_v28  ;;  %v1217_v9 = vadd.f32 %v1216_v7, %v2194_v29  ;;  %1420 = vmatprep.mubr.f32.mxu1 %v1252_v63  ;;  %1525 = vmatprep.mubr.f32.mxu0 %v1254_v0  ;;  %v1255_v14 = vmax.f32 %v1102_v4, 0.0  ;;  %v1257_v15 = vmax.f32 %v1215_v5, 0.0 }
 0x4e2   :  { %v1107_v10 = vpop.f32.mrf.mxu1  ;;  %v1220_v11 = vpop.f32.mrf.mxu0  ;;  %1421 = vmatmul.mubr.f32.gmra.mxu1 %v1251_v1  ;;  %1526 = vmatmul.mubr.f32.gmra.mxu0 %v1253_v3 }
 0x4e3   :  { %v1256_v12 = vmax.f32 %v1104_v8, 0.0  ;;  %v1258_v13 = vmax.f32 %v1217_v9, 0.0  ;;  %v1108_v16 = vadd.f32 %v1107_v10, %v2186_v26  ;;  %v1221_v17 = vadd.f32 %v1220_v11, %v2188_v27 }
 0x4e4   :  { %v1109_v18 = vpop.f32.mrf.mxu1  ;;  %v1222_v19 = vpop.f32.mrf.mxu0 }
 0x4e5   :  { %v1110_v20 = vadd.f32 %v1109_v18, %v2192_v28  ;;  %v1223_v21 = vadd.f32 %v1222_v19, %v2194_v29  ;;  %1425 = vmatprep.mubr.f32.mxu1 %v1256_v12  ;;  %1530 = vmatprep.mubr.f32.mxu0 %v1258_v13  ;;  %v1259_v30 = vmax.f32 %v1108_v16, 0.0  ;;  %v1261_v31 = vmax.f32 %v1221_v17, 0.0 }
 0x4e6   :  { %v1113_v22 = vpop.f32.mrf.mxu1  ;;  %v1226_v23 = vpop.f32.mrf.mxu0  ;;  %1426 = vmatmul.mubr.f32.gmra.mxu1 %v1255_v14  ;;  %1531 = vmatmul.mubr.f32.gmra.mxu0 %v1257_v15 }
 0x4e7   :  { %v1260_v24 = vmax.f32 %v1110_v20, 0.0  ;;  %v1262_v25 = vmax.f32 %v1223_v21, 0.0  ;;  %v1114_v34 = vadd.f32 %v1113_v22, %v2186_v26  ;;  %v1227_v38 = vadd.f32 %v1226_v23, %v2188_v27 }
 0x4e8   :  { %v1115_v39 = vpop.f32.mrf.mxu1  ;;  %v1228_v40 = vpop.f32.mrf.mxu0 }
 0x4e9   :  { %v1116_v41 = vadd.f32 %v1115_v39, %v2192_v28  ;;  %v1229_v33 = vadd.f32 %v1228_v40, %v2194_v29  ;;  %1430 = vmatprep.mubr.f32.mxu1 %v1260_v24  ;;  %1535 = vmatprep.mubr.f32.mxu0 %v1262_v25  ;;  %v1263_v35 = vmax.f32 %v1114_v34, 0.0  ;;  %v1265_v45 = vmax.f32 %v1227_v38, 0.0 }
 0x4ea   :  { %v1119_v42 = vpop.f32.mrf.mxu1  ;;  %v1232_v43 = vpop.f32.mrf.mxu0  ;;  %1431 = vmatmul.mubr.f32.gmra.mxu1 %v1259_v30  ;;  %1536 = vmatmul.mubr.f32.gmra.mxu0 %v1261_v31 }
 0x4eb   :  { %v1264_v44 = vmax.f32 %v1116_v41, 0.0  ;;  %v1266_v32 = vmax.f32 %v1229_v33, 0.0  ;;  %v1120_v46 = vadd.f32 %v1119_v42, %v2186_v26  ;;  %v1233_v47 = vadd.f32 %v1232_v43, %v2188_v27 }
 0x4ec   :  { %v1121_v48 = vpop.f32.mrf.mxu1  ;;  %v1234_v49 = vpop.f32.mrf.mxu0 }
 0x4ed   :  { %v1122_v50 = vadd.f32 %v1121_v48, %v2192_v28  ;;  %v1235_v51 = vadd.f32 %v1234_v49, %v2194_v29  ;;  %1435 = vmatprep.mubr.f32.mxu1 %v1264_v44  ;;  %1540 = vmatprep.mubr.f32.mxu0 %v1266_v32  ;;  %v1267_v36 = vmax.f32 %v1120_v46, 0.0  ;;  %v1269_v56 = vmax.f32 %v1233_v47, 0.0 }
 0x4ee   :  { %v1125_v52 = vpop.f32.mrf.mxu1  ;;  %v1238_v53 = vpop.f32.mrf.mxu0  ;;  %1436 = vmatmul.mubr.f32.gmra.mxu1 %v1263_v35  ;;  %1541 = vmatmul.mubr.f32.gmra.mxu0 %v1265_v45 }
 0x4ef   :  { %v1268_v54 = vmax.f32 %v1122_v50, 0.0  ;;  %v1270_v55 = vmax.f32 %v1235_v51, 0.0  ;;  %v1126_v2 = vadd.f32 %v1125_v52, %v2186_v26  ;;  %v1239_v37 = vadd.f32 %v1238_v53, %v2188_v27 }
 0x4f0   :  { %v1127_v57 = vpop.f32.mrf.mxu1  ;;  %v1240_v58 = vpop.f32.mrf.mxu0 }
 0x4f1   :  { %v1128_v59 = vadd.f32 %v1127_v57, %v2192_v28  ;;  %v1241_v60 = vadd.f32 %v1240_v58, %v2194_v29  ;;  %1440 = vmatprep.mubr.f32.mxu1 %v1268_v54  ;;  %1545 = vmatprep.mubr.f32.mxu0 %v1270_v55  ;;  %v1271_v63 = vmax.f32 %v1126_v2, 0.0  ;;  %v1273_v0 = vmax.f32 %v1239_v37, 0.0  ;;  %v2231_v28 = vld [vmem:[%s2279_s14] ss:$0 sm:$0xff] }
 0x4f2   :  { %1441 = vmatmul.mubr.f32.gmra.mxu1 %v1267_v36  ;;  %1546 = vmatmul.mubr.f32.gmra.mxu0 %v1269_v56 }
 0x4f3   :  { %v1272_v61 = vmax.f32 %v1128_v59, 0.0  ;;  %v1274_v62 = vmax.f32 %v1241_v60, 0.0 }
 0x4f5   :  { %1445 = vmatprep.mubr.f32.mxu1 %v1272_v61  ;;  %1550 = vmatprep.mubr.f32.mxu0 %v1274_v62 }
 0x4f6   :  { %1446 = vmatmul.mubr.f32.gmra.mxu1 %v1271_v63  ;;  %1551 = vmatmul.mubr.f32.gmra.mxu0 %v1273_v0 }
 0x59a   :  { %v1686_v26 = vpop.f32.mrf.mxu1  ;;  %v1742_v27 = vpop.f32.mrf.mxu0 }
 0x59c   :  { %v1687_v29 = vpop.f32.mrf.mxu1  ;;  %v1743_v1 = vpop.f32.mrf.mxu0 }
 0x59d   :  { %v1688_v3 = vadd.f32 %v1687_v29, %v1686_v26  ;;  %v1744_v7 = vadd.f32 %v1743_v1, %v1742_v27 }
 0x59e   :  { %v1689_v4 = vpop.f32.mrf.mxu1  ;;  %v1745_v5 = vpop.f32.mrf.mxu0 }
 0x59f   :  { %v1413_v6 = vadd.f32 %v1688_v3, %v2231_v28 }
 0x5a0   :  { %v1690_v8 = vpop.f32.mrf.mxu1  ;;  %v1746_v9 = vpop.f32.mrf.mxu0 }
 0x5a1   :  { %v1518_v10 = vadd.f32 %v1744_v7, %v1413_v6  ;;  %v1691_v11 = vadd.f32 %v1690_v8, %v1689_v4  ;;  %v1747_v15 = vadd.f32 %v1746_v9, %v1745_v5 }
 0x5a2   :  { %v1692_v12 = vpop.f32.mrf.mxu1  ;;  %v1748_v13 = vpop.f32.mrf.mxu0 }
 0x5a3   :  { %1556 = vst [vmem:[%s2280_s15] sm:$0xff] %v1518_v10  ;;  %v1418_v14 = vadd.f32 %v1691_v11, %v2231_v28 }
 0x5a4   :  { %v1693_v16 = vpop.f32.mrf.mxu1  ;;  %v1749_v17 = vpop.f32.mrf.mxu0 }
 0x5a5   :  { %v1523_v18 = vadd.f32 %v1747_v15, %v1418_v14  ;;  %v1694_v19 = vadd.f32 %v1693_v16, %v1692_v12  ;;  %v1750_v23 = vadd.f32 %v1749_v17, %v1748_v13 }
 0x5a6   :  { %v1695_v20 = vpop.f32.mrf.mxu1  ;;  %v1751_v21 = vpop.f32.mrf.mxu0 }
 0x5a7   :  { %1557 = vst [vmem:[%s2280_s15 + $0x8] sm:$0xff] %v1523_v18  ;;  %v1423_v22 = vadd.f32 %v1694_v19, %v2231_v28 }
 0x5a8   :  { %v1696_v24 = vpop.f32.mrf.mxu1  ;;  %v1752_v25 = vpop.f32.mrf.mxu0 }
 0x5a9   :  { %v1528_v30 = vadd.f32 %v1750_v23, %v1423_v22  ;;  %v1697_v31 = vadd.f32 %v1696_v24, %v1695_v20  ;;  %v1753_v40 = vadd.f32 %v1752_v25, %v1751_v21 }
 0x5aa   :  { %v1698_v34 = vpop.f32.mrf.mxu1  ;;  %v1754_v38 = vpop.f32.mrf.mxu0 }
 0x5ab   :  { %1558 = vst [vmem:[%s2280_s15 + $0x10] sm:$0xff] %v1528_v30  ;;  %v1428_v39 = vadd.f32 %v1697_v31, %v2231_v28 }
 0x5ac   :  { %v1699_v41 = vpop.f32.mrf.mxu1  ;;  %v1755_v33 = vpop.f32.mrf.mxu0 }
 0x5ad   :  { %v1533_v42 = vadd.f32 %v1753_v40, %v1428_v39  ;;  %v1700_v43 = vadd.f32 %v1699_v41, %v1698_v34  ;;  %v1756_v45 = vadd.f32 %v1755_v33, %v1754_v38 }
 0x5ae   :  { %v1701_v44 = vpop.f32.mrf.mxu1  ;;  %v1757_v32 = vpop.f32.mrf.mxu0 }
 0x5af   :  { %1559 = vst [vmem:[%s2280_s15 + $0x18] sm:$0xff] %v1533_v42  ;;  %v1433_v35 = vadd.f32 %v1700_v43, %v2231_v28 }
 0x5b0   :  { %v1702_v46 = vpop.f32.mrf.mxu1  ;;  %v1758_v47 = vpop.f32.mrf.mxu0 }
 0x5b1   :  { %v1538_v48 = vadd.f32 %v1756_v45, %v1433_v35  ;;  %v1703_v49 = vadd.f32 %v1702_v46, %v1701_v44  ;;  %v1759_v53 = vadd.f32 %v1758_v47, %v1757_v32 }
 0x5b2   :  { %v1704_v50 = vpop.f32.mrf.mxu1  ;;  %v1760_v51 = vpop.f32.mrf.mxu0 }
 0x5b3   :  { %1560 = vst [vmem:[%s2280_s15 + $0x20] sm:$0xff] %v1538_v48  ;;  %v1438_v52 = vadd.f32 %v1703_v49, %v2231_v28 }
 0x5b4   :  { %v1705_v54 = vpop.f32.mrf.mxu1  ;;  %v1761_v55 = vpop.f32.mrf.mxu0 }
 0x5b5   :  { %v1543_v36 = vadd.f32 %v1759_v53, %v1438_v52  ;;  %v1706_v56 = vadd.f32 %v1705_v54, %v1704_v50  ;;  %v1762_v58 = vadd.f32 %v1761_v55, %v1760_v51 }
 0x5b6   :  { %v1707_v2 = vpop.f32.mrf.mxu1  ;;  %v1763_v37 = vpop.f32.mrf.mxu0 }
 0x5b7   :  { %1561 = vst [vmem:[%s2280_s15 + $0x28] sm:$0xff] %v1543_v36  ;;  %v1443_v57 = vadd.f32 %v1706_v56, %v2231_v28 }
 0x5b8   :  { %v1708_v59 = vpop.f32.mrf.mxu1  ;;  %v1764_v60 = vpop.f32.mrf.mxu0 }
 0x5b9   :  { %v1548_v61 = vadd.f32 %v1762_v58, %v1443_v57  ;;  %v1709_v62 = vadd.f32 %v1708_v59, %v1707_v2  ;;  %v1765_v0 = vadd.f32 %v1764_v60, %v1763_v37 }
 0x5bb   :  { %1562 = vst [vmem:[%s2280_s15 + $0x30] sm:$0xff] %v1548_v61  ;;  %v1448_v63 = vadd.f32 %v1709_v62, %v2231_v28 }
 0x5bd   :  { %v1553_v26 = vadd.f32 %v1765_v0, %v1448_v63 }
 0x5bf   :  { %1563 = vst [vmem:[%s2280_s15 + $0x38] sm:$0xff] %v1553_v26 }
 0x5c0   :  { %1568 = vsyncpa [#allocation3], 1 }
 0x5c1   :  { %1569 = vsyncpa [#allocation5], 1 }

</bundles_post_ra>
